<compile_context>
chip_gen: v7x
topology: tpu7x:2x2x1
jax: 0.10.0
libtpu: 0.0.40
codegen_flags: <defaults>
</compile_context>

<pallas_src>
import functools

import jax
import jax.numpy as jnp
from jax import lax
from jax.experimental import pallas as pl
from jax.experimental.pallas import tpu as pltpu


def _feature_interp_kernel(dxyz_ref, sxyz_ref, sqs_ref, sfeat_ref, out_ref, *,
                           k, eps, keep_mask):
    dxyz = dxyz_ref[0]      # (TN1, 3)   query xyz, queries on sublanes
    sxyz = sxyz_ref[0]      # (3, N2)    key xyz, keys on lanes
    sq_s = sqs_ref[0]       # (1, N2)    per-key |s|^2 (hoisted to the wrapper)
    sfeat = sfeat_ref[0]    # (C2, N2)   key features

    tn1 = dxyz.shape[0]
    n2 = sxyz.shape[1]

    # Squared distances |q|^2 + |s|^2 - 2 q.s : cross term on the MXU with the
    # factor -2 folded into the tiny (TN1, 3) query tile; |q|^2 is a tiny
    # 3-lane reduce; |s|^2 arrives precomputed per batch.
    cross2 = jnp.dot(dxyz * jnp.float32(-2.0), sxyz,
                     preferred_element_type=jnp.float32)           # (TN1, N2)
    sq_d = jnp.sum(dxyz * dxyz, axis=1, keepdims=True)             # (TN1, 1)
    dist = jnp.maximum(cross2 + sq_s + sq_d, 0.0)                  # (TN1, N2)

    # Fused min+argmin key: pack the column index into the low bits of the
    # non-negative f32 distance viewed as int32 (int order == float order for
    # non-negative patterns); ties break toward the lower index, matching the
    # reference argsort. Index bits steal <= ceil(log2(N2)) mantissa bits.
    col = lax.broadcasted_iota(jnp.int32, (tn1, n2), 1)
    keep = jnp.int32(keep_mask)
    packed = (pltpu.bitcast(dist, jnp.int32) & keep) | col         # (TN1, N2)

    sentinel = jnp.int32(0x7F800000)   # +inf bit pattern > any finite packed key

    def select_step(carry):
        packed, w = carry
        pmin = jnp.min(packed, axis=-1, keepdims=True)             # 1 XLU reduce
        mask = packed == pmin                                      # winner column
        dmin = pltpu.bitcast(pmin & keep, jnp.float32)             # (TN1, 1)
        inv_d = pl.reciprocal(jnp.maximum(dmin, jnp.float32(eps)),
                              approx=True)                         # EUP slot
        w = w + jnp.where(mask, inv_d, jnp.float32(0.0))
        packed = jnp.where(mask, sentinel, packed)                 # retire winner
        return packed, w

    w = jnp.zeros((tn1, n2), jnp.float32)
    if k <= 4:
        carry = (packed, w)
        for _ in range(k):                 # unrolled: full LLO visibility
            carry = select_step(carry)
        w = carry[1]
    else:
        # bound live ranges of the (TN1, N2) temporaries for larger k
        w = lax.fori_loop(0, k, lambda i, c: select_step(c), (packed, w))[1]

    # Interpolation on the MXU, contracting N2 of both operands (canonical
    # A @ B^T form — no explicit relayout of w):  (C2, N2) x (TN1, N2)^T.
    interp = lax.dot_general(sfeat, w,
                             dimension_numbers=(((1,), (1,)), ((), ())),
                             preferred_element_type=jnp.float32)   # (C2, TN1)

    # Deferred normalization: the per-query weight sum is produced directly in
    # (1, TN1) lane layout by a tiny ones x w^T matmul (MXU has slack), and the
    # small (C2, TN1) result is divided exactly — no (TN1, N2) scaling pass and
    # no approx reciprocal in the normalization.
    ones = jnp.ones((8, n2), jnp.float32)
    norm = lax.dot_general(ones, w,
                           dimension_numbers=(((1,), (1,)), ((), ())),
                           preferred_element_type=jnp.float32)[0:1, :]  # (1, TN1)
    out_ref[0] = (interp / norm).astype(out_ref.dtype)


def feature_interpolator(dense_xyz, sparse_xyz, dense_feature, sparse_feature,
                         num_neighbors=3, eps=1e-10, tile_n1=256):
    B, _, N1 = dense_xyz.shape
    _, _, N2 = sparse_xyz.shape
    C2 = sparse_feature.shape[1]
    assert num_neighbors <= N2, "cannot select more neighbors than key points"

    # Queries pre-transposed to (B, N1, 3) so N1 maps to sublanes in-kernel,
    # padded to a multiple of the tile for lane-dense (unmasked) output stores.
    dxyz_t = jnp.transpose(dense_xyz, (0, 2, 1)).astype(jnp.float32)

    # Tile size: 256 amortizes the per-grid-step overhead on all generations
    # and still fits v7x's smaller VMEM; shrink automatically for small N1.
    tile_n1 = 128 * max(1, min(tile_n1 // 128, pl.cdiv(N1, 128)))
    n1p = tile_n1 * pl.cdiv(N1, tile_n1)
    if n1p != N1:
        dxyz_t = jnp.pad(dxyz_t, ((0, 0), (0, n1p - N1), (0, 0)))

    sxyz_f = sparse_xyz.astype(jnp.float32)
    sfeat_f = sparse_feature.astype(jnp.float32)
    # |s|^2 hoisted out of the per-tile work: computed once per batch here.
    sq_s = jnp.sum(sxyz_f * sxyz_f, axis=1, keepdims=True)          # (B, 1, N2)

    idx_bits = (N2 - 1).bit_length() if N2 > 1 else 0
    keep_mask = ~((1 << idx_bits) - 1)

    kernel = functools.partial(_feature_interp_kernel, k=int(num_neighbors),
                               eps=float(eps), keep_mask=keep_mask)

    # VMEM budget derived from the actual block + live-temporary sizes
    # (double-buffered blocks + ~6 live (tile_n1, N2) temporaries), clamped to
    # a window that is safe on v5e/v6e (128 MiB phys) and v7x (64 MiB phys).
    blk = 4 * (tile_n1 * 3 + 3 * N2 + N2 + C2 * N2 + C2 * tile_n1)
    tmp = 4 * tile_n1 * N2 * 6
    vmem_limit = int(min(max(2 * blk + tmp + (4 << 20), 16 << 20), 96 << 20))

    interp = pl.pallas_call(
        kernel,
        out_shape=jax.ShapeDtypeStruct((B, C2, n1p), jnp.float32),
        grid=(B, n1p // tile_n1),
        in_specs=[
            pl.BlockSpec((1, tile_n1, 3), lambda b, t: (b, t, 0)),   # query tile
            pl.BlockSpec((1, 3, N2), lambda b, t: (b, 0, 0)),        # keys (batch-resident)
            pl.BlockSpec((1, 1, N2), lambda b, t: (b, 0, 0)),        # |s|^2 per key
            pl.BlockSpec((1, C2, N2), lambda b, t: (b, 0, 0)),       # key features
            # NOTE: on v7x, pipeline_mode=pl.Buffered(1) on the three
            # batch-constant blocks would reclaim VMEM headroom for bigger tiles.
        ],
        out_specs=pl.BlockSpec((1, C2, tile_n1), lambda b, t: (b, 0, t)),
        compiler_params=pltpu.CompilerParams(
            # batch axis leads and is the only "parallel" axis, so a 2-core
            # chip shards on b and keeps its key blocks resident per core.
            dimension_semantics=("parallel", "arbitrary"),
            vmem_limit_bytes=vmem_limit,
        ),
    )(dxyz_t, sxyz_f, sq_s, sfeat_f)

    interp = interp[:, :, :N1]
    if dense_feature is None:
        return interp
    # torch.cat([interpolated, dense], dim=1) — cheap XLA concat in the wrapper.
    return jnp.concatenate([interp, dense_feature.astype(jnp.float32)], axis=1)


def _reference(dense_xyz, sparse_xyz, dense_feature, sparse_feature, k, eps):
    # pure-JAX reference (same math, using argsort + one-hot)
    d = dense_xyz[:, :, :, None] - sparse_xyz[:, :, None, :]      # (B,3,N1,N2)
    dist = jnp.sum(d * d, axis=1)                                 # (B,N1,N2)
    idx = jnp.argsort(dist, axis=-1)[..., :k]                     # (B,N1,k)
    dk = jnp.take_along_axis(dist, idx, axis=-1)                  # (B,N1,k)
    inv = 1.0 / jnp.clip(dk, eps)
    wk = inv / jnp.sum(inv, axis=-1, keepdims=True)
    n2 = sparse_xyz.shape[2]
    W = jnp.sum(jax.nn.one_hot(idx, n2, dtype=jnp.float32) * wk[..., None],
                axis=2)                                           # (B,N1,N2)
    interp = jnp.einsum('bcn,bmn->bcm', sparse_feature, W)        # (B,C2,N1)
    if dense_feature is None:
        return interp
    return jnp.concatenate([interp, dense_feature], axis=1)


if __name__ == "__main__":
    key = jax.random.PRNGKey(0)
    k0, k1, k2, k3 = jax.random.split(key, 4)

    B, N1, N2 = 2, 16, 8
    C1, C2 = 4, 6
    NUM_NEIGHBORS = 3
    EPS = 1e-10

    dense_xyz = jax.random.normal(k0, (B, 3, N1), dtype=jnp.float32)
    sparse_xyz = jax.random.normal(k1, (B, 3, N2), dtype=jnp.float32)
    dense_feature = jax.random.normal(k2, (B, C1, N1), dtype=jnp.float32)
    sparse_feature = jax.random.normal(k3, (B, C2, N2), dtype=jnp.float32)

    out = feature_interpolator(dense_xyz, sparse_xyz, dense_feature,
                               sparse_feature, NUM_NEIGHBORS, EPS)
    out = jax.block_until_ready(out)

    ref = _reference(dense_xyz, sparse_xyz, dense_feature, sparse_feature,
                     NUM_NEIGHBORS, EPS)
    assert out.shape == (B, C1 + C2, N1), out.shape
    # tolerance covers the EUP approx per-neighbor reciprocal (~1e-4 rel), the
    # index-bit quantization of the selected distance, and MXU rounding.
    assert jnp.allclose(out, ref, atol=1e-2, rtol=1e-2), \
        float(jnp.max(jnp.abs(out - ref)))

    print("KERNEL_OK")
</pallas_src>

<mosaic_0001>
module attributes {stable_mosaic.version = 11 : i64} {
  func.func @_feature_interp_kernel(%arg0: i32, %arg1: i32, %arg2: memref<1x128x3xf32, #tpu.memory_space<vmem>>, %arg3: memref<1x3x8xf32, #tpu.memory_space<vmem>>, %arg4: memref<1x1x8xf32, #tpu.memory_space<vmem>>, %arg5: memref<1x6x8xf32, #tpu.memory_space<vmem>>, %arg6: memref<1x6x128xf32, #tpu.memory_space<vmem>>) attributes {dimension_semantics = [#tpu.dimension_semantics<parallel>, #tpu.dimension_semantics<arbitrary>], iteration_bounds = array<i64: 2, 1>, scalar_prefetch = 0 : i64, scratch_operands = 0 : i64, tpu.core_type = #tpu.core_type<tc>, window_params = [{transform_indices = @transform_0, window_bounds = array<i64: 1, 128, 3>}, {transform_indices = @transform_1, window_bounds = array<i64: 1, 3, 8>}, {transform_indices = @transform_2, window_bounds = array<i64: 1, 1, 8>}, {transform_indices = @transform_3, window_bounds = array<i64: 1, 6, 8>}, {transform_indices = @transform_4, window_bounds = array<i64: 1, 6, 128>}]} {
    %c0 = arith.constant 0 : index
    %c0_0 = arith.constant 0 : index
    %c0_1 = arith.constant 0 : index
    %0 = vector.load %arg2[%c0, %c0_0, %c0_1] : memref<1x128x3xf32, #tpu.memory_space<vmem>>, vector<1x128x3xf32>
    %1 = vector.shape_cast %0 : vector<1x128x3xf32> to vector<128x3xf32>
    %c0_2 = arith.constant 0 : index
    %c0_3 = arith.constant 0 : index
    %c0_4 = arith.constant 0 : index
    %2 = vector.load %arg3[%c0_2, %c0_3, %c0_4] : memref<1x3x8xf32, #tpu.memory_space<vmem>>, vector<1x3x8xf32>
    %3 = vector.shape_cast %2 : vector<1x3x8xf32> to vector<3x8xf32>
    %c0_5 = arith.constant 0 : index
    %c0_6 = arith.constant 0 : index
    %c0_7 = arith.constant 0 : index
    %4 = vector.load %arg4[%c0_5, %c0_6, %c0_7] : memref<1x1x8xf32, #tpu.memory_space<vmem>>, vector<1x1x8xf32>
    %5 = vector.shape_cast %4 : vector<1x1x8xf32> to vector<1x8xf32>
    %c0_8 = arith.constant 0 : index
    %c0_9 = arith.constant 0 : index
    %c0_10 = arith.constant 0 : index
    %6 = vector.load %arg5[%c0_8, %c0_9, %c0_10] : memref<1x6x8xf32, #tpu.memory_space<vmem>>, vector<1x6x8xf32>
    %7 = vector.shape_cast %6 : vector<1x6x8xf32> to vector<6x8xf32>
    %cst = arith.constant -2.000000e+00 : f32
    %8 = vector.broadcast %cst : f32 to vector<128x3xf32>
    %9 = arith.mulf %1, %8 : vector<128x3xf32>
    %cst_11 = arith.constant dense<0.000000e+00> : vector<128x8xf32>
    %10 = tpu.matmul %9, %3, %cst_11 {dimension_numbers = #tpu.dot_dimension_numbers<[1], [0], [0], [1], [0, 0, 1, 1], [], []>} : vector<128x3xf32>, vector<3x8xf32>, vector<128x8xf32> -> vector<128x8xf32>
    %11 = arith.mulf %1, %1 : vector<128x3xf32>
    %cst_12 = arith.constant dense<0.000000e+00> : vector<128xf32>
    %12 = vector.multi_reduction <add>, %11, %cst_12 [1] : vector<128x3xf32> to vector<128xf32>
    %13 = vector.shape_cast %12 : vector<128xf32> to vector<128x1xf32>
    %14 = vector.broadcast %5 : vector<1x8xf32> to vector<128x8xf32>
    %15 = arith.addf %10, %14 : vector<128x8xf32>
    %16 = vector.broadcast %13 : vector<128x1xf32> to vector<128x8xf32>
    %17 = arith.addf %15, %16 : vector<128x8xf32>
    %cst_13 = arith.constant 0.000000e+00 : f32
    %18 = vector.broadcast %cst_13 : f32 to vector<128x8xf32>
    %19 = arith.maximumf %17, %18 : vector<128x8xf32>
    %20 = tpu.iota {dimensions = array<i32: 1>} : vector<128x8xi32>
    %21 = tpu.bitcast %19 : vector<128x8xf32> -> vector<128x8xi32>
    %c-8_i32 = arith.constant -8 : i32
    %22 = vector.broadcast %c-8_i32 : i32 to vector<128x8xi32>
    %23 = arith.andi %21, %22 : vector<128x8xi32>
    %24 = arith.ori %23, %20 : vector<128x8xi32>
    %cst_14 = arith.constant 0.000000e+00 : f32
    %25 = vector.broadcast %cst_14 : f32 to vector<128x8xf32>
    %cst_15 = arith.constant dense<2147483647> : vector<128xi32>
    %26 = vector.multi_reduction <minsi>, %24, %cst_15 [1] : vector<128x8xi32> to vector<128xi32>
    %27 = vector.shape_cast %26 : vector<128xi32> to vector<128x1xi32>
    %28 = vector.broadcast %27 : vector<128x1xi32> to vector<128x8xi32>
    %29 = arith.cmpi eq, %24, %28 : vector<128x8xi32>
    %c-8_i32_16 = arith.constant -8 : i32
    %30 = vector.broadcast %c-8_i32_16 : i32 to vector<128x1xi32>
    %31 = arith.andi %27, %30 : vector<128x1xi32>
    %32 = tpu.bitcast %31 : vector<128x1xi32> -> vector<128x1xf32>
    %cst_17 = arith.constant 1.000000e-10 : f32
    %33 = vector.broadcast %cst_17 : f32 to vector<128x1xf32>
    %34 = arith.maximumf %32, %33 : vector<128x1xf32>
    %35 = tpu.reciprocal %34 {approx = true} : vector<128x1xf32> -> vector<128x1xf32>
    %cst_18 = arith.constant 0.000000e+00 : f32
    %36 = vector.shape_cast %35 : vector<128x1xf32> to vector<128x1xf32>
    %37 = vector.broadcast %36 : vector<128x1xf32> to vector<128x8xf32>
    %38 = vector.broadcast %cst_18 : f32 to vector<128x8xf32>
    %39 = arith.select %29, %37, %38 : vector<128x8xi1>, vector<128x8xf32>
    %40 = arith.addf %25, %39 : vector<128x8xf32>
    %c2139095040_i32 = arith.constant 2139095040 : i32
    %41 = vector.broadcast %c2139095040_i32 : i32 to vector<128x8xi32>
    %42 = arith.select %29, %41, %24 : vector<128x8xi1>, vector<128x8xi32>
    %cst_19 = arith.constant dense<2147483647> : vector<128xi32>
    %43 = vector.multi_reduction <minsi>, %42, %cst_19 [1] : vector<128x8xi32> to vector<128xi32>
    %44 = vector.shape_cast %43 : vector<128xi32> to vector<128x1xi32>
    %45 = vector.broadcast %44 : vector<128x1xi32> to vector<128x8xi32>
    %46 = arith.cmpi eq, %42, %45 : vector<128x8xi32>
    %c-8_i32_20 = arith.constant -8 : i32
    %47 = vector.broadcast %c-8_i32_20 : i32 to vector<128x1xi32>
    %48 = arith.andi %44, %47 : vector<128x1xi32>
    %49 = tpu.bitcast %48 : vector<128x1xi32> -> vector<128x1xf32>
    %cst_21 = arith.constant 1.000000e-10 : f32
    %50 = vector.broadcast %cst_21 : f32 to vector<128x1xf32>
    %51 = arith.maximumf %49, %50 : vector<128x1xf32>
    %52 = tpu.reciprocal %51 {approx = true} : vector<128x1xf32> -> vector<128x1xf32>
    %cst_22 = arith.constant 0.000000e+00 : f32
    %53 = vector.shape_cast %52 : vector<128x1xf32> to vector<128x1xf32>
    %54 = vector.broadcast %53 : vector<128x1xf32> to vector<128x8xf32>
    %55 = vector.broadcast %cst_22 : f32 to vector<128x8xf32>
    %56 = arith.select %46, %54, %55 : vector<128x8xi1>, vector<128x8xf32>
    %57 = arith.addf %40, %56 : vector<128x8xf32>
    %c2139095040_i32_23 = arith.constant 2139095040 : i32
    %58 = vector.broadcast %c2139095040_i32_23 : i32 to vector<128x8xi32>
    %59 = arith.select %46, %58, %42 : vector<128x8xi1>, vector<128x8xi32>
    %cst_24 = arith.constant dense<2147483647> : vector<128xi32>
    %60 = vector.multi_reduction <minsi>, %59, %cst_24 [1] : vector<128x8xi32> to vector<128xi32>
    %61 = vector.shape_cast %60 : vector<128xi32> to vector<128x1xi32>
    %62 = vector.broadcast %61 : vector<128x1xi32> to vector<128x8xi32>
    %63 = arith.cmpi eq, %59, %62 : vector<128x8xi32>
    %c-8_i32_25 = arith.constant -8 : i32
    %64 = vector.broadcast %c-8_i32_25 : i32 to vector<128x1xi32>
    %65 = arith.andi %61, %64 : vector<128x1xi32>
    %66 = tpu.bitcast %65 : vector<128x1xi32> -> vector<128x1xf32>
    %cst_26 = arith.constant 1.000000e-10 : f32
    %67 = vector.broadcast %cst_26 : f32 to vector<128x1xf32>
    %68 = arith.maximumf %66, %67 : vector<128x1xf32>
    %69 = tpu.reciprocal %68 {approx = true} : vector<128x1xf32> -> vector<128x1xf32>
    %cst_27 = arith.constant 0.000000e+00 : f32
    %70 = vector.shape_cast %69 : vector<128x1xf32> to vector<128x1xf32>
    %71 = vector.broadcast %70 : vector<128x1xf32> to vector<128x8xf32>
    %72 = vector.broadcast %cst_27 : f32 to vector<128x8xf32>
    %73 = arith.select %63, %71, %72 : vector<128x8xi1>, vector<128x8xf32>
    %74 = arith.addf %57, %73 : vector<128x8xf32>
    %cst_28 = arith.constant dense<0.000000e+00> : vector<6x128xf32>
    %75 = tpu.matmul %7, %74, %cst_28 {dimension_numbers = #tpu.dot_dimension_numbers<[1], [1], [0], [0], [0, 0, 1, 0], [], []>} : vector<6x8xf32>, vector<128x8xf32>, vector<6x128xf32> -> vector<6x128xf32>
    %cst_29 = arith.constant 1.000000e+00 : f32
    %76 = vector.broadcast %cst_29 : f32 to vector<8x8xf32>
    %cst_30 = arith.constant dense<0.000000e+00> : vector<8x128xf32>
    %77 = tpu.matmul %76, %74, %cst_30 {dimension_numbers = #tpu.dot_dimension_numbers<[1], [1], [0], [0], [0, 0, 1, 0], [], []>} : vector<8x8xf32>, vector<128x8xf32>, vector<8x128xf32> -> vector<8x128xf32>
    %78 = vector.extract_strided_slice %77 {offsets = [0, 0], sizes = [1, 128], strides = [1, 1]} : vector<8x128xf32> to vector<1x128xf32>
    %79 = vector.broadcast %78 : vector<1x128xf32> to vector<6x128xf32>
    %80 = arith.divf %75, %79 : vector<6x128xf32>
    %c0_31 = arith.constant 0 : index
    %c0_32 = arith.constant 0 : index
    %c0_33 = arith.constant 0 : index
    %81 = vector.load %arg6[%c0_31, %c0_32, %c0_33] : memref<1x6x128xf32, #tpu.memory_space<vmem>>, vector<1x6x128xf32>
    %82 = vector.shape_cast %81 : vector<1x6x128xf32> to vector<6x128xf32>
    %83 = vector.shape_cast %80 : vector<6x128xf32> to vector<1x6x128xf32>
    tpu.vector_store %arg6[%c0_31, %c0_32, %c0_33], %83 {strides = array<i32>} : memref<1x6x128xf32, #tpu.memory_space<vmem>>, vector<1x6x128xf32>,
    return
  }
  func.func @transform_0(%arg0: i32, %arg1: i32) -> (i32, i32, i32) {
    %c0_i32 = arith.constant 0 : i32
    %c0_i32_0 = arith.constant 0 : i32
    return %arg0, %arg1, %c0_i32 : i32, i32, i32
  }
  func.func @transform_1(%arg0: i32, %arg1: i32) -> (i32, i32, i32) {
    %c0_i32 = arith.constant 0 : i32
    %c0_i32_0 = arith.constant 0 : i32
    %c0_i32_1 = arith.constant 0 : i32
    return %arg0, %c0_i32, %c0_i32_0 : i32, i32, i32
  }
  func.func @transform_2(%arg0: i32, %arg1: i32) -> (i32, i32, i32) {
    %c0_i32 = arith.constant 0 : i32
    %c0_i32_0 = arith.constant 0 : i32
    %c0_i32_1 = arith.constant 0 : i32
    return %arg0, %c0_i32, %c0_i32_0 : i32, i32, i32
  }
  func.func @transform_3(%arg0: i32, %arg1: i32) -> (i32, i32, i32) {
    %c0_i32 = arith.constant 0 : i32
    %c0_i32_0 = arith.constant 0 : i32
    %c0_i32_1 = arith.constant 0 : i32
    return %arg0, %c0_i32, %c0_i32_0 : i32, i32, i32
  }
  func.func @transform_4(%arg0: i32, %arg1: i32) -> (i32, i32, i32) {
    %c0_i32 = arith.constant 0 : i32
    %c0_i32_0 = arith.constant 0 : i32
    return %arg0, %c0_i32, %arg1 : i32, i32, i32
  }
}

</mosaic_0001>

<bundles_post_ra>
// kernel: tpu_custom_call.1
= control target key start
LH: loop header
LB: loop body
LE: loop exit
PB: predicated region body
PF: predicated region fallthrough
CT: control target
= control target key end

     0   :  { %s2520_s15 = smov 0   ;;  %s2522_s16 = smov 0   ;;  %s3995_s0 = inlined_call_operand.vmem [shape: f32[2,128,3], index: 0, kind: input, shape index: {}]   ;;  %s3996_s1 = inlined_call_operand.vmem [shape: f32[2,3,8], index: 1, kind: input, shape index: {}]   ;;  %s3997_s2 = inlined_call_operand.vmem [shape: f32[2,1,8], index: 2, kind: input, shape index: {}]   ;;  %s3998_s3 = inlined_call_operand.vmem [shape: f32[2,6,8], index: 3, kind: input, shape index: {}]   ;;  %s3999_s4 = inlined_call_operand.vmem [shape: f32[2,6,128], index: 4, kind: output, shape index: {}]  }
   0x1   :  { %s2524_s17 = smov 0  }
   0x2 LB: > { %s26_s18 = sadd.s32 1, %s2485_s16  ;;  %p2069_p0 = scmp.ge.s32.totalorder %s2489_s17, 1  ;;  %s2489_s17 = sphi %s2524_s17, %s14_s17   ;;  %s2485_s16 = sphi %s2522_s16, %s4072_s16   ;;  %s2481_s15 = sphi %s2520_s15, %s4071_s15  }
   0x3   : > { %p28_p1 = scmp.ge.s32.totalorder %s26_s18, 2  ;;  %p209_p2 = scmp.lt.s32.totalorder %s2489_s17, 3 }
   0x5   : > { %s4074_s18 = smov (%p28_p1, %s26_s18), 0  ;;  %p210_p3 = pnand %p2069_p0, %p209_p2 }
   0x7   : > { %213 = sbr.rel (%p210_p3) target bundleno = 1453 (0x5ad), region = 36 }
   0xe   : > { %p253_p4 = scmp.lt.s32.totalorder %s2481_s15, 1  ;;  %vm434_vm0 = vcmask 1042432   ;;  %vm331_vm1 = vcmask 23552   ;;  %vm665_vm2 = vcmask 64512  }
  0x10   : > { %s4076_s15 = smov (!%p253_p4, %s2481_s15), 1 }
  0x11   : > { %s2129_s19 = sshll.u32 %s4076_s15, 7  ;;  %s2072_s20 = sshll.u32 %s4076_s15, 2 }
  0x12   : > { %s2545_s23 = scalar_lea.vmem %s3995_s0, %s2129_s19  ;;  %s265_s26 = scalar_lea.vmem %s3996_s1, %s2072_s20 }
  0x13   : > { %v296_v0 = vld [vmem:[%s265_s26] sm:$0x7]  ;;  %v281_v2 = vld [vmem:[%s2545_s23 + $0x8] sm:$0xff]  ;;  %v282_v5 = vld [vmem:[%s2545_s23 + $0x10] sm:$0xff]  ;;  %s268_s29 = scalar_lea.vmem %s3997_s2, %s4076_s15  ;;  %s2073_s30 = sshll.u32 %s4076_s15, 3 }
  0x14   : > { %v280_v1 = vld [vmem:[%s2545_s23] sm:$0xff]  ;;  %2181 = vmatprep.subr.msk.mxu0 %vm434_vm0, %v296_v0  ;;  %v300_v4 = vmul.f32 -2.0, %v281_v2  ;;  %v283_v6 = vld [vmem:[%s2545_s23 + $0x18] sm:$0xff]  ;;  %v301_v7 = vmul.f32 -2.0, %v282_v5  ;;  %v317_v10 = vmul.f32 %v282_v5, %v282_v5  ;;  %v316_v12 = vmul.f32 %v281_v2, %v281_v2  ;;  %v285_v14 = vld [vmem:[%s2545_s23 + $0x28] sm:$0xff]  ;;  %s272_s7 = scalar_lea.vmem %s3998_s3, %s2073_s30  ;;  %s279_s10 = scalar_lea.vmem %s3999_s4, %s2073_s30 }
  0x15   : > { %v299_v3 = vmul.f32 -2.0, %v280_v1  ;;  %2182 = vmatpush3.msk.msra.mxu0 %vm434_vm0, %v296_v0  ;;  %v284_v8 = vld [vmem:[%s2545_s23 + $0x20] sm:$0xff]  ;;  %v315_v9 = vmul.f32 %v280_v1, %v280_v1  ;;  %v302_v11 = vmul.f32 -2.0, %v283_v6  ;;  %v318_v15 = vmul.f32 %v283_v6, %v283_v6  ;;  %v286_v16 = vld [vmem:[%s2545_s23 + $0x30] sm:$0xff]  ;;  %v287_v23 = vld [vmem:[%s2545_s23 + $0x38] sm:$0xff] }
  0x16   : > { %v303_v13 = vmul.f32 -2.0, %v284_v8  ;;  %v338_v18 = vsel %vm331_vm1, %v317_v10, 0.0  ;;  %v304_v19 = vmul.f32 -2.0, %v285_v14  ;;  %v335_v20 = vsel %vm331_vm1, %v316_v12, 0.0  ;;  %v288_v26 = vld [vmem:[%s2545_s23 + $0x40] sm:$0xff]  ;;  %v289_v31 = vld [vmem:[%s2545_s23 + $0x48] sm:$0xff] }
  0x17   : > { %2183 = vmatprep.mubr.msk.f32.mxu0 %vm331_vm1, %v299_v3  ;;  %v332_v17 = vsel %vm331_vm1, %v315_v9, 0.0  ;;  %339 = vadd.xlane.f32.xlu1 %v338_v18  ;;  %v319_v21 = vmul.f32 %v284_v8, %v284_v8  ;;  %v305_v22 = vmul.f32 -2.0, %v286_v16  ;;  %v341_v24 = vsel %vm331_vm1, %v318_v15, 0.0  ;;  %v290_v34 = vld [vmem:[%s2545_s23 + $0x50] sm:$0xff]  ;;  %v291_v39 = vld [vmem:[%s2545_s23 + $0x58] sm:$0xff]  ;;  %v292_v42 = vld [vmem:[%s2545_s23 + $0x60] sm:$0xff] }
  0x18   : > { %2184 = vmatmul.mubr.msk.f32.vlgmr.msra.gmra.mrb[0].mxu0 %vm331_vm1, %v300_v4  ;;  %333 = vadd.xlane.f32.xlu0 %v332_v17  ;;  %v320_v25 = vmul.f32 %v285_v14, %v285_v14  ;;  %v306_v27 = vmul.f32 -2.0, %v287_v23  ;;  %v321_v29 = vmul.f32 %v286_v16, %v286_v16  ;;  %v307_v30 = vmul.f32 -2.0, %v288_v26  ;;  %v293_v47 = vld [vmem:[%s2545_s23 + $0x68] sm:$0xff]  ;;  %v294_v50 = vld [vmem:[%s2545_s23 + $0x70] sm:$0xff]  ;;  %v295_v55 = vld [vmem:[%s2545_s23 + $0x78] sm:$0xff] }
  0x19   : > { %2186 = vmatprep.mubr.msk.f32.mxu0 %vm331_vm1, %v301_v7  ;;  %v344_v28 = vsel %vm331_vm1, %v319_v21, 0.0  ;;  %v322_v33 = vmul.f32 %v287_v23, %v287_v23  ;;  %v308_v35 = vmul.f32 -2.0, %v289_v31  ;;  %v323_v37 = vmul.f32 %v288_v26, %v288_v26  ;;  %v2602_v5 = vld [vmem:[%s268_s29] ss:$0 sm:$0xff] }
  0x1a   : > { %v347_v32 = vsel %vm331_vm1, %v320_v25, 0.0  ;;  %v350_v36 = vsel %vm331_vm1, %v321_v29, 0.0  ;;  %v309_v38 = vmul.f32 -2.0, %v290_v34  ;;  %v324_v41 = vmul.f32 %v289_v31, %v289_v31 }
  0x1b   : > { %342 = vadd.xlane.f32.xlu1 %v341_v24  ;;  %v353_v40 = vsel %vm331_vm1, %v322_v33, 0.0  ;;  %v310_v43 = vmul.f32 -2.0, %v291_v39  ;;  %v356_v44 = vsel %vm331_vm1, %v323_v37, 0.0  ;;  %v325_v45 = vmul.f32 %v290_v34, %v290_v34 }
  0x1c   : > { %2187 = vmatmul.mubr.msk.f32.gmra.mrb[2].mxu0 %vm331_vm1, %v302_v11  ;;  %336 = vadd.xlane.f32.xlu0 %v335_v20  ;;  %v311_v46 = vmul.f32 -2.0, %v292_v42  ;;  %v359_v48 = vsel %vm331_vm1, %v324_v41, 0.0  ;;  %v326_v49 = vmul.f32 %v291_v39, %v291_v39  ;;  %v312_v51 = vmul.f32 -2.0, %v293_v47 }
  0x1d   : > { %2189 = vmatprep.mubr.msk.f32.mxu0 %vm331_vm1, %v303_v13  ;;  %v362_v52 = vsel %vm331_vm1, %v325_v45, 0.0  ;;  %v327_v53 = vmul.f32 %v292_v42, %v292_v42  ;;  %v313_v54 = vmul.f32 -2.0, %v294_v50  ;;  %v328_v57 = vmul.f32 %v293_v47, %v293_v47 }
  0x1e   : > { %v365_v56 = vsel %vm331_vm1, %v326_v49, 0.0  ;;  %v314_v58 = vmul.f32 -2.0, %v295_v55  ;;  %v329_v60 = vmul.f32 %v294_v50, %v294_v50  ;;  %v330_v62 = vmul.f32 %v295_v55, %v295_v55 }
  0x1f   : > { %348 = vadd.xlane.f32.xlu1 %v347_v32  ;;  %v368_v59 = vsel %vm331_vm1, %v327_v53, 0.0  ;;  %v371_v61 = vsel %vm331_vm1, %v328_v57, 0.0  ;;  %v4000_v11 = vlaneseq }
  0x20   : > { %2190 = vmatmul.mubr.msk.f32.gmra.mrb[4].mxu0 %vm331_vm1, %v304_v19  ;;  %345 = vadd.xlane.f32.xlu0 %v344_v28  ;;  %v374_v63 = vsel %vm331_vm1, %v329_v60, 0.0  ;;  %v377_v0 = vsel %vm331_vm1, %v330_v62, 0.0 }
  0x21   : > { %2192 = vmatprep.mubr.msk.f32.mxu0 %vm331_vm1, %v305_v22  ;;  %v2607_v17 = vand.u32 127, %v4000_v11 }
  0x23   : > { %354 = vadd.xlane.f32.xlu1 %v353_v40 }
  0x24   : > { %2193 = vmatmul.mubr.msk.f32.gmra.mrb[6].mxu0 %vm331_vm1, %v306_v27  ;;  %351 = vadd.xlane.f32.xlu0 %v350_v36 }
  0x25   : > { %2195 = vmatprep.mubr.msk.f32.mxu0 %vm331_vm1, %v307_v30 }
  0x27   : > { %360 = vadd.xlane.f32.xlu1 %v359_v48 }
  0x28   : > { %2196 = vmatmul.mubr.msk.f32.gmra.mrb[8].mxu0 %vm331_vm1, %v308_v35  ;;  %357 = vadd.xlane.f32.xlu0 %v356_v44 }
  0x29   : > { %2198 = vmatprep.mubr.msk.f32.mxu0 %vm331_vm1, %v309_v38 }
  0x2b   : > { %366 = vadd.xlane.f32.xlu1 %v365_v56 }
  0x2c   : > { %2199 = vmatmul.mubr.msk.f32.gmra.mrb[10].mxu0 %vm331_vm1, %v310_v43  ;;  %363 = vadd.xlane.f32.xlu0 %v362_v52 }
  0x2d   : > { %2201 = vmatprep.mubr.msk.f32.mxu0 %vm331_vm1, %v311_v46 }
  0x2f   : > { %372 = vadd.xlane.f32.xlu1 %v371_v61 }
  0x30   : > { %2202 = vmatmul.mubr.msk.f32.gmra.mrb[12].mxu0 %vm331_vm1, %v312_v51  ;;  %369 = vadd.xlane.f32.xlu0 %v368_v59 }
  0x31   : > { %2204 = vmatprep.mubr.msk.f32.mxu0 %vm331_vm1, %v313_v54 }
  0x33   : > { %378 = vadd.xlane.f32.xlu1 %v377_v0 }
  0x34   : > { %2205 = vmatmul.mubr.msk.f32.gmra.mrb[14].mxu0 %vm331_vm1, %v314_v58  ;;  %375 = vadd.xlane.f32.xlu0 %v374_v63 }
  0xa4   : > { %v340_v1 = vpop.xlane.xlu1 %339 }
  0xa5   : > { %v334_v2 = vpop.xlane.xlu0 %333 }
  0xa8   : > { %v343_v3 = vpop.xlane.xlu1 %342 }
  0xa9   : > { %v337_v4 = vpop.xlane.xlu0 %336 }
  0xac   : > { %v349_v6 = vpop.xlane.xlu1 %348 }
  0xad   : > { %v346_v7 = vpop.xlane.xlu0 %345 }
  0xb0   : > { %v355_v16 = vpop.xlane.xlu1 %354 }
  0xb1   : > { %v352_v21 = vpop.xlane.xlu0 %351 }
  0xb4   : > { %v361_v36 = vpop.xlane.xlu1 %360 }
  0xb5   : > { %v358_v40 = vpop.xlane.xlu0 %357 }
  0xb8   : > { %v367_v0 = vpop.xlane.xlu1 %366 }
  0xeb   : > { %v2185_v8 = vpop.f32.mrb[0].mxu0 }
  0xec   : > { %v510_v9 = vadd.f32 %v2185_v8, %v2602_v5  ;;  %v504_v10 = vpop.f32.mrb[1].mxu0 }
  0xed   : > { %v505_v12 = vadd.f32 %v2602_v5, %v504_v10 }
  0xee   : > { %v584_v13 = vadd.f32 %v510_v9, %v337_v4 }
  0xef   : > { %v583_v14 = vadd.f32 %v505_v12, %v334_v2  ;;  %v2188_v15 = vpop.f32.mrb[2].mxu0 }
  0xf0   : > { %v600_v18 = vmax.f32 %v584_v13, 0.0  ;;  %v520_v19 = vadd.f32 %v2188_v15, %v2602_v5  ;;  %v514_v20 = vpop.f32.mrb[3].mxu0 }
  0xf1   : > { %v599_v22 = vmax.f32 %v583_v14, 0.0  ;;  %v515_v23 = vadd.f32 %v2602_v5, %v514_v20 }
  0xf2   : > { %v634_v24 = vand.u32 4294967288, %v600_v18  ;;  %v586_v25 = vadd.f32 %v520_v19, %v343_v3 }
  0xf3   : > { %v633_v26 = vand.u32 4294967288, %v599_v22  ;;  %v585_v27 = vadd.f32 %v515_v23, %v340_v1  ;;  %v2191_v28 = vpop.f32.mrb[4].mxu0 }
  0xf4   : > { %v2612_v29 = vor.u32 %v634_v24, %v2607_v17  ;;  %v602_v30 = vmax.f32 %v586_v25, 0.0  ;;  %v530_v31 = vadd.f32 %v2191_v28, %v2602_v5  ;;  %v524_v32 = vpop.f32.mrb[5].mxu0 }
  0xf5   : > { %v2616_v33 = vor.u32 %v633_v26, %v2607_v17  ;;  %v601_v34 = vmax.f32 %v585_v27, 0.0  ;;  %v525_v35 = vadd.f32 %v2602_v5, %v524_v32 }
  0xf6   : > { %v636_v37 = vand.u32 4294967288, %v602_v30  ;;  %v588_v38 = vadd.f32 %v530_v31, %v349_v6  ;;  %v2621_v39 = vsel %vm665_vm2, %v2612_v29, 2147483647 }
  0xf7   : > { %v635_v41 = vand.u32 4294967288, %v601_v34  ;;  %v587_v42 = vadd.f32 %v525_v35, %v346_v7  ;;  %v2194_v43 = vpop.f32.mrb[6].mxu0  ;;  %v683_v44 = vshra.s32 %v2621_v39, 16  ;;  %v2626_v45 = vsel %vm665_vm2, %v2616_v33, 2147483647  ;;  %v364_v7 = vpop.xlane.xlu0 %363 }
  0xf8   : > { %v2629_v46 = vor.u32 %v636_v37, %v2607_v17  ;;  %v604_v47 = vmax.f32 %v588_v38, 0.0  ;;  %v540_v48 = vadd.f32 %v2194_v43, %v2602_v5  ;;  %v534_v49 = vpop.f32.mrb[7].mxu0  ;;  %v668_v50 = vshra.s32 %v2626_v45, 16  ;;  %v373_v34 = vpop.xlane.xlu1 %372 }
  0xf9   : > { %v2634_v51 = vor.u32 %v635_v41, %v2607_v17  ;;  %v603_v52 = vmax.f32 %v587_v42, 0.0  ;;  %v535_v53 = vadd.f32 %v2602_v5, %v534_v49  ;;  %v2637_v54 = vcvt.s32.f32 %v683_v44 }
  0xfa   : > { %v638_v55 = vand.u32 4294967288, %v604_v47  ;;  %v590_v56 = vadd.f32 %v540_v48, %v355_v16  ;;  %v2639_v57 = vcvt.s32.f32 %v668_v50  ;;  %v2643_v58 = vsel %vm665_vm2, %v2629_v46, 2147483647 }
  0xfb   : > { %v637_v59 = vand.u32 4294967288, %v603_v52  ;;  %v589_v60 = vadd.f32 %v535_v53, %v352_v21  ;;  %686 = vmin.xlane.f32.xlu1 %v2637_v54  ;;  %v2197_v61 = vpop.f32.mrb[8].mxu0  ;;  %v713_v62 = vshra.s32 %v2643_v58, 16  ;;  %v2649_v63 = vsel %vm665_vm2, %v2634_v51, 2147483647  ;;  %v370_v38 = vpop.xlane.xlu0 %369 }
  0xfc   : > { %v2652_v1 = vor.u32 %v638_v55, %v2607_v17  ;;  %v606_v2 = vmax.f32 %v590_v56, 0.0  ;;  %v550_v3 = vadd.f32 %v2197_v61, %v2602_v5  ;;  %v544_v4 = vpop.f32.mrb[9].mxu0  ;;  %671 = vmin.xlane.f32.xlu0 %v2639_v57  ;;  %v698_v6 = vshra.s32 %v2649_v63, 16 }
  0xfd   : > { %v2658_v8 = vor.u32 %v637_v59, %v2607_v17  ;;  %v605_v9 = vmax.f32 %v589_v60, 0.0  ;;  %v545_v10 = vadd.f32 %v2602_v5, %v544_v4  ;;  %v2661_v12 = vcvt.s32.f32 %v713_v62 }
  0xfe   : > { %v640_v13 = vand.u32 4294967288, %v606_v2  ;;  %v592_v14 = vadd.f32 %v550_v3, %v361_v36  ;;  %v2663_v15 = vcvt.s32.f32 %v698_v6  ;;  %v2667_v16 = vsel %vm665_vm2, %v2652_v1, 2147483647 }
  0xff   : > { %v639_v18 = vand.u32 4294967288, %v605_v9  ;;  %v591_v19 = vadd.f32 %v545_v10, %v358_v40  ;;  %716 = vmin.xlane.f32.xlu1 %v2661_v12  ;;  %v2200_v20 = vpop.f32.mrb[10].mxu0  ;;  %v743_v21 = vshra.s32 %v2667_v16, 16  ;;  %v2673_v22 = vsel %vm665_vm2, %v2658_v8, 2147483647 }
 0x100   : > { %v2676_v23 = vor.u32 %v640_v13, %v2607_v17  ;;  %v608_v24 = vmax.f32 %v592_v14, 0.0  ;;  %v560_v25 = vadd.f32 %v2200_v20, %v2602_v5  ;;  %v554_v26 = vpop.f32.mrb[11].mxu0  ;;  %701 = vmin.xlane.f32.xlu0 %v2663_v15  ;;  %v728_v27 = vshra.s32 %v2673_v22, 16  ;;  %v376_v20 = vpop.xlane.xlu0 %375 }
 0x101   : > { %v2682_v28 = vor.u32 %v639_v18, %v2607_v17  ;;  %v607_v30 = vmax.f32 %v591_v19, 0.0  ;;  %v555_v31 = vadd.f32 %v2602_v5, %v554_v26  ;;  %v2685_v32 = vcvt.s32.f32 %v743_v21 }
 0x102   : > { %v642_v35 = vand.u32 4294967288, %v608_v24  ;;  %v594_v36 = vadd.f32 %v560_v25, %v367_v0  ;;  %v2687_v37 = vcvt.s32.f32 %v728_v27  ;;  %v2691_v40 = vsel %vm665_vm2, %v2676_v23, 2147483647 }
 0x103   : > { %v641_v41 = vand.u32 4294967288, %v607_v30  ;;  %v593_v42 = vadd.f32 %v555_v31, %v364_v7  ;;  %746 = vmin.xlane.f32.xlu1 %v2685_v32  ;;  %v2203_v43 = vpop.f32.mrb[12].mxu0  ;;  %v773_v44 = vshra.s32 %v2691_v40, 16  ;;  %v2697_v47 = vsel %vm665_vm2, %v2682_v28, 2147483647  ;;  %v379_v7 = vpop.xlane.xlu1 %378 }
 0x104   : > { %v2700_v48 = vor.u32 %v642_v35, %v2607_v17  ;;  %v610_v49 = vmax.f32 %v594_v36, 0.0  ;;  %v570_v50 = vadd.f32 %v2203_v43, %v2602_v5  ;;  %v564_v52 = vpop.f32.mrb[13].mxu0  ;;  %731 = vmin.xlane.f32.xlu0 %v2687_v37  ;;  %v758_v53 = vshra.s32 %v2697_v47, 16 }
 0x105   : > { %v2706_v55 = vor.u32 %v641_v41, %v2607_v17  ;;  %v609_v56 = vmax.f32 %v593_v42, 0.0  ;;  %v565_v59 = vadd.f32 %v2602_v5, %v564_v52  ;;  %v2709_v60 = vcvt.s32.f32 %v773_v44 }
 0x106   : > { %v644_v61 = vand.u32 4294967288, %v610_v49  ;;  %v596_v62 = vadd.f32 %v570_v50, %v373_v34  ;;  %v2711_v0 = vcvt.s32.f32 %v758_v53  ;;  %v2715_v2 = vsel %vm665_vm2, %v2700_v48, 2147483647 }
 0x107   : > { %v643_v3 = vand.u32 4294967288, %v609_v56  ;;  %v595_v4 = vadd.f32 %v565_v59, %v370_v38  ;;  %776 = vmin.xlane.f32.xlu1 %v2709_v60  ;;  %v2206_v6 = vpop.f32.mrb[14].mxu0  ;;  %v803_v9 = vshra.s32 %v2715_v2, 16  ;;  %v2721_v10 = vsel %vm665_vm2, %v2706_v55, 2147483647 }
 0x108   : > { %v2724_v13 = vor.u32 %v644_v61, %v2607_v17  ;;  %v612_v14 = vmax.f32 %v596_v62, 0.0  ;;  %v580_v18 = vadd.f32 %v2206_v6, %v2602_v5  ;;  %v574_v19 = vpop.f32.mrb[15].mxu0  ;;  %761 = vmin.xlane.f32.xlu0 %v2711_v0  ;;  %v788_v21 = vshra.s32 %v2721_v10, 16 }
 0x109   : > { %v2730_v24 = vor.u32 %v643_v3, %v2607_v17  ;;  %v611_v25 = vmax.f32 %v595_v4, 0.0  ;;  %v575_v26 = vadd.f32 %v2602_v5, %v574_v19  ;;  %v2733_v27 = vcvt.s32.f32 %v803_v9 }
 0x10a   : > { %v646_v30 = vand.u32 4294967288, %v612_v14  ;;  %v598_v31 = vadd.f32 %v580_v18, %v379_v7  ;;  %v2735_v34 = vcvt.s32.f32 %v788_v21  ;;  %v2739_v35 = vsel %vm665_vm2, %v2724_v13, 2147483647 }
 0x10b   : > { %v645_v36 = vand.u32 4294967288, %v611_v25  ;;  %v597_v38 = vadd.f32 %v575_v26, %v376_v20  ;;  %806 = vmin.xlane.f32.xlu1 %v2733_v27  ;;  %v833_v41 = vshra.s32 %v2739_v35, 16  ;;  %v2745_v42 = vsel %vm665_vm2, %v2730_v24, 2147483647 }
 0x10c   : > { %v2748_v5 = vor.u32 %v646_v30, %v2607_v17  ;;  %v614_v43 = vmax.f32 %v598_v31, 0.0  ;;  %791 = vmin.xlane.f32.xlu0 %v2735_v34  ;;  %v818_v44 = vshra.s32 %v2745_v42, 16  ;;  %v682_v26 = vand.u32 65535, %v2621_v39 }
 0x10d   : > { %v2753_v49 = vor.u32 %v645_v36, %v2607_v17  ;;  %v613_v50 = vmax.f32 %v597_v38, 0.0  ;;  %v2755_v52 = vcvt.s32.f32 %v833_v41  ;;  %v667_v30 = vand.u32 65535, %v2626_v45 }
 0x10e   : > { %v648_v53 = vand.u32 4294967288, %v614_v43  ;;  %v2757_v56 = vcvt.s32.f32 %v818_v44  ;;  %v2761_v59 = vsel %vm665_vm2, %v2748_v5, 2147483647  ;;  %v684_v36 = vcvt.s32.f32 %v682_v26 }
 0x10f   : > { %v647_v61 = vand.u32 4294967288, %v613_v50  ;;  %836 = vmin.xlane.f32.xlu1 %v2755_v52  ;;  %v863_v62 = vshra.s32 %v2761_v59, 16  ;;  %v2767_v3 = vsel %vm665_vm2, %v2753_v49, 2147483647  ;;  %v712_v38 = vand.u32 65535, %v2643_v58 }
 0x110   : > { %v2770_v4 = vor.u32 %v648_v53, %v2607_v17  ;;  %821 = vmin.xlane.f32.xlu0 %v2757_v56  ;;  %v848_v6 = vshra.s32 %v2767_v3, 16  ;;  %v669_v43 = vcvt.s32.f32 %v667_v30  ;;  %v697_v44 = vand.u32 65535, %v2649_v63 }
 0x111   : > { %v2775_v7 = vor.u32 %v647_v61, %v2607_v17  ;;  %v2777_v9 = vcvt.s32.f32 %v863_v62  ;;  %v714_v53 = vcvt.s32.f32 %v712_v38  ;;  %v742_v58 = vand.u32 65535, %v2667_v16 }
 0x112   : > { %v2779_v14 = vcvt.s32.f32 %v848_v6  ;;  %v2783_v18 = vsel %vm665_vm2, %v2770_v4, 2147483647  ;;  %v727_v63 = vand.u32 65535, %v2673_v22  ;;  %v772_v16 = vand.u32 65535, %v2691_v40 }
 0x113   : > { %866 = vmin.xlane.f32.xlu1 %v2777_v9  ;;  %v893_v19 = vshra.s32 %v2783_v18, 16  ;;  %v2789_v20 = vsel %vm665_vm2, %v2775_v7, 2147483647  ;;  %v757_v22 = vand.u32 65535, %v2697_v47  ;;  %v802_v40 = vand.u32 65535, %v2715_v2 }
 0x114   : > { %851 = vmin.xlane.f32.xlu0 %v2779_v14  ;;  %v878_v17 = vshra.s32 %v2789_v20, 16  ;;  %v787_v47 = vand.u32 65535, %v2721_v10  ;;  %v832_v2 = vand.u32 65535, %v2739_v35  ;;  %v817_v10 = vand.u32 65535, %v2745_v42 }
 0x115   : > { %v2793_v21 = vcvt.s32.f32 %v893_v19  ;;  %v744_v19 = vcvt.s32.f32 %v742_v58  ;;  %v862_v35 = vand.u32 65535, %v2761_v59 }
 0x116   : > { %v2795_v25 = vcvt.s32.f32 %v878_v17 }
 0x117   : > { %896 = vmin.xlane.f32.xlu1 %v2793_v21 }
 0x118   : > { %881 = vmin.xlane.f32.xlu0 %v2795_v25 }
 0x188   : > { %v2801_v31 = vpop.xlane.xlu1 %686 }
 0x189   : > { %v2804_v41 = vpop.xlane.xlu0 %671  ;;  %vm688_vm3 = vcmp.eq.f32.partialorder %v2637_v54, %v2801_v31  ;;  %v699_v54 = vcvt.s32.f32 %v697_v44 }
 0x18a   : > { %v689_v50 = vsel %vm688_vm3, %v684_v36, inf  ;;  %vm673_vm4 = vcmp.eq.f32.partialorder %v2639_v57, %v2804_v41  ;;  %v774_v36 = vcvt.s32.f32 %v772_v16  ;;  %v892_v16 = vand.u32 65535, %v2783_v18 }
 0x18b   : > { %690 = vmin.xlane.f32.xlu1 %v689_v50  ;;  %v674_v39 = vsel %vm673_vm4, %v669_v43, inf  ;;  %v804_v50 = vcvt.s32.f32 %v802_v40 }
 0x18c   : > { %v2811_v45 = vpop.xlane.xlu1 %716  ;;  %675 = vmin.xlane.f32.xlu0 %v674_v39 }
 0x18d   : > { %v2814_v61 = vpop.xlane.xlu0 %701  ;;  %vm718_vm5 = vcmp.eq.f32.partialorder %v2661_v12, %v2811_v45  ;;  %v729_v12 = vcvt.s32.f32 %v727_v63  ;;  %v723_v40 = vcvt.f32.s32 %v2811_v45 }
 0x18e   : > { %v719_v62 = vsel %vm718_vm5, %v714_v53, inf  ;;  %vm703_vm6 = vcmp.eq.f32.partialorder %v2663_v15, %v2814_v61 }
 0x18f   : > { %720 = vmin.xlane.f32.xlu1 %v719_v62  ;;  %v704_v57 = vsel %vm703_vm6, %v699_v54, inf  ;;  %v834_v54 = vcvt.s32.f32 %v832_v2  ;;  %v847_v62 = vand.u32 65535, %v2767_v3  ;;  %v724_v45 = vshll.u32 %v723_v40, 16 }
 0x190   : > { %v2821_v6 = vpop.xlane.xlu1 %746  ;;  %705 = vmin.xlane.f32.xlu0 %v704_v57 }
 0x191   : > { %v2824_v17 = vpop.xlane.xlu0 %731  ;;  %vm748_vm7 = vcmp.eq.f32.partialorder %v2685_v32, %v2821_v6  ;;  %v759_v32 = vcvt.s32.f32 %v757_v22  ;;  %v849_v59 = vcvt.s32.f32 %v847_v62  ;;  %v877_v22 = vand.u32 65535, %v2789_v20 }
 0x192   : > { %v749_v26 = vsel %vm748_vm7, %v744_v19, inf  ;;  %vm733_vm8 = vcmp.eq.f32.partialorder %v2687_v37, %v2824_v17  ;;  %v864_v19 = vcvt.s32.f32 %v862_v35  ;;  %v693_v20 = vcvt.f32.s32 %v2801_v31 }
 0x193   : > { %750 = vmin.xlane.f32.xlu1 %v749_v26  ;;  %v734_v15 = vsel %vm733_vm8, %v729_v12, inf }
 0x194   : > { %v2831_v30 = vpop.xlane.xlu1 %776  ;;  %735 = vmin.xlane.f32.xlu0 %v734_v15 }
 0x195   : > { %v2834_v38 = vpop.xlane.xlu0 %761  ;;  %vm778_vm9 = vcmp.eq.f32.partialorder %v2709_v60, %v2831_v30  ;;  %v789_v60 = vcvt.s32.f32 %v787_v47  ;;  %v753_v47 = vcvt.f32.s32 %v2821_v6 }
 0x196   : > { %v779_v43 = vsel %vm778_vm9, %v774_v36, inf  ;;  %vm763_vm10 = vcmp.eq.f32.partialorder %v2711_v0, %v2834_v38  ;;  %v879_v36 = vcvt.s32.f32 %v877_v22 }
 0x197   : > { %780 = vmin.xlane.f32.xlu1 %v779_v43  ;;  %v764_v37 = vsel %vm763_vm10, %v759_v32, inf  ;;  %v708_v32 = vcvt.f32.s32 %v2814_v61  ;;  %v694_v43 = vshll.u32 %v693_v20, 16 }
 0x198   : > { %v2841_v44 = vpop.xlane.xlu1 %806  ;;  %765 = vmin.xlane.f32.xlu0 %v764_v37  ;;  %v783_v37 = vcvt.f32.s32 %v2831_v30 }
 0x199   : > { %v2844_v39 = vpop.xlane.xlu0 %791  ;;  %vm808_vm11 = vcmp.eq.f32.partialorder %v2733_v27, %v2841_v44  ;;  %v819_v27 = vcvt.s32.f32 %v817_v10  ;;  %v709_v10 = vshll.u32 %v708_v32, 16 }
 0x19a   : > { %v809_v53 = vsel %vm808_vm11, %v804_v50, inf  ;;  %vm793_vm12 = vcmp.eq.f32.partialorder %v2735_v34, %v2844_v39  ;;  %v813_v50 = vcvt.f32.s32 %v2841_v44  ;;  %v798_v31 = vcvt.f32.s32 %v2844_v39 }
 0x19b   : > { %810 = vmin.xlane.f32.xlu1 %v809_v53  ;;  %v794_v0 = vsel %vm793_vm12, %v789_v60, inf }
 0x19c   : > { %v2851_v58 = vpop.xlane.xlu1 %836  ;;  %795 = vmin.xlane.f32.xlu0 %v794_v0  ;;  %v754_v0 = vshll.u32 %v753_v47, 16  ;;  %v2880_v44 = vshll.u32 %v813_v50, 16  ;;  %v2882_v39 = vshll.u32 %v798_v31, 16 }
 0x19d   : > { %v822_v63 = vpop.xlane.xlu0 %821  ;;  %vm838_vm13 = vcmp.eq.f32.partialorder %v2755_v52, %v2851_v58 }
 0x19e   : > { %v839_v42 = vsel %vm838_vm13, %v834_v54, inf  ;;  %vm823_vm14 = vcmp.eq.f32.partialorder %v2757_v56, %v822_v63  ;;  %v894_v56 = vcvt.s32.f32 %v892_v16  ;;  %v828_v60 = vcvt.f32.s32 %v822_v63 }
 0x19f   : > { %840 = vmin.xlane.f32.xlu1 %v839_v42  ;;  %v824_v34 = vsel %vm823_vm14, %v819_v27, inf  ;;  %v784_v27 = vshll.u32 %v783_v37, 16 }
 0x1a0   : > { %v867_v57 = vpop.xlane.xlu1 %866  ;;  %825 = vmin.xlane.f32.xlu0 %v824_v34  ;;  %v2886_v63 = vshll.u32 %v828_v60, 16 }
 0x1a1   : > { %v852_v12 = vpop.xlane.xlu0 %851  ;;  %vm868_vm15 = vcmp.eq.f32.partialorder %v2777_v9, %v867_v57  ;;  %v873_v61 = vcvt.f32.s32 %v867_v57 }
 0x1a2   : > { %v869_v52 = vsel %vm868_vm15, %v864_v19, inf  ;;  %vm853_vm0 = vcmp.eq.f32.partialorder %v2779_v14, %v852_v12  ;;  %v678_v14 = vcvt.f32.s32 %v2804_v41  ;;  %v843_v41 = vcvt.f32.s32 %v2851_v58 }
 0x1a3   : > { %870 = vmin.xlane.f32.xlu1 %v869_v52  ;;  %v854_v3 = vsel %vm853_vm0, %v849_v59, inf  ;;  %v858_v53 = vcvt.f32.s32 %v852_v12  ;;  %v2890_v34 = vshll.u32 %v873_v61, 16 }
 0x1a4   : > { %v897_v26 = vpop.xlane.xlu1 %896  ;;  %855 = vmin.xlane.f32.xlu0 %v854_v3  ;;  %v679_v2 = vshll.u32 %v678_v14, 16  ;;  %v2884_v58 = vshll.u32 %v843_v41, 16 }
 0x1a5   : > { %v2862_v15 = vpop.xlane.xlu0 %881  ;;  %vm898_vm1 = vcmp.eq.f32.partialorder %v2793_v21, %v897_v26  ;;  %v738_v21 = vcvt.f32.s32 %v2824_v17  ;;  %v903_v54 = vcvt.f32.s32 %v897_v26  ;;  %v2892_v57 = vshll.u32 %v858_v53, 16 }
 0x1a6   : > { %v899_v18 = vsel %vm898_vm1, %v894_v56, inf  ;;  %vm883_vm3 = vcmp.eq.f32.partialorder %v2795_v25, %v2862_v15  ;;  %v768_v25 = vcvt.f32.s32 %v2834_v38  ;;  %v888_v19 = vcvt.f32.s32 %v2862_v15 }
 0x1a7   : > { %900 = vmin.xlane.f32.xlu1 %v899_v18  ;;  %v884_v9 = vsel %vm883_vm3, %v879_v36, inf  ;;  %v739_v17 = vshll.u32 %v738_v21, 16  ;;  %v2897_v59 = vshll.u32 %v903_v54, 16 }
 0x1a8   : > { %885 = vmin.xlane.f32.xlu0 %v884_v9  ;;  %v2878_v38 = vshll.u32 %v768_v25, 16 }
 0x218   : > { %v691_v6 = vpop.xlane.xlu1 %690 }
 0x219   : > { %v692_v35 = vcvt.f32.s32 %v691_v6  ;;  %v676_v30 = vpop.xlane.xlu0 %675 }
 0x21a   : > { %v677_v62 = vcvt.f32.s32 %v676_v30 }
 0x21b   : > { %v2888_v42 = vadd.s32 %v694_v43, %v692_v35 }
 0x21c   : > { %v2895_v16 = vadd.s32 %v679_v2, %v677_v62  ;;  %v721_v12 = vpop.xlane.xlu1 %720 }
 0x21d   : > { %vm907_vm4 = vcmp.eq.s32.totalorder %v2612_v29, %v2888_v42  ;;  %v923_v22 = vand.u32 4294967288, %v2888_v42  ;;  %v722_v52 = vcvt.f32.s32 %v721_v12  ;;  %v706_v3 = vpop.xlane.xlu0 %705 }
 0x21e   : > { %vm906_vm5 = vcmp.eq.s32.totalorder %v2616_v33, %v2895_v16  ;;  %v922_v26 = vand.u32 4294967288, %v2895_v16  ;;  %v707_v56 = vcvt.f32.s32 %v706_v3  ;;  %v2909_v15 = vsel %vm907_vm4, 2139095040, %v2612_v29 }
 0x21f   : > { %v955_v36 = vmax.f32 %v923_v22, 1e-10  ;;  %v2911_v18 = vadd.s32 %v724_v45, %v722_v52  ;;  %v2915_v9 = vsel %vm665_vm2, %v2909_v15, 2147483647  ;;  %v2921_v20 = vsel %vm906_vm5, 2139095040, %v2616_v33 }
 0x220   : > { %v954_v14 = vmax.f32 %v922_v26, 1e-10  ;;  %v2923_v40 = vadd.s32 %v709_v10, %v707_v56  ;;  %v751_v32 = vpop.xlane.xlu1 %750  ;;  %v1051_v47 = vshra.s32 %v2915_v9, 16  ;;  %v2928_v21 = vsel %vm665_vm2, %v2921_v20, 2147483647 }
 0x221   : > { %2369 = vrcp.f32 %v955_v36  ;;  %vm909_vm6 = vcmp.eq.s32.totalorder %v2629_v46, %v2911_v18  ;;  %v925_v43 = vand.u32 4294967288, %v2911_v18  ;;  %v752_v37 = vcvt.f32.s32 %v751_v32  ;;  %v736_v25 = vpop.xlane.xlu0 %735 }
 0x222   : > { %2371 = vrcp.f32 %v954_v14  ;;  %vm908_vm7 = vcmp.eq.s32.totalorder %v2634_v51, %v2923_v40  ;;  %v924_v50 = vand.u32 4294967288, %v2923_v40  ;;  %v737_v2 = vcvt.f32.s32 %v736_v25 }
 0x223   : > { %v957_v31 = vmax.f32 %v925_v43, 1e-10  ;;  %v2936_v41 = vadd.s32 %v754_v0, %v752_v37  ;;  %v2938_v60 = vcvt.s32.f32 %v1051_v47  ;;  %v1036_v45 = vshra.s32 %v2928_v21, 16 }
 0x224   : > { %v2941_v10 = vshll.u32 %v888_v19, 16  ;;  %v956_v61 = vmax.f32 %v924_v50, 1e-10  ;;  %v2943_v53 = vadd.s32 %v739_v17, %v737_v2  ;;  %v781_v6 = vpop.xlane.xlu1 %780  ;;  %v2949_v54 = vsel %vm909_vm6, 2139095040, %v2629_v46 }
 0x225   : > { %2373 = vrcp.f32 %v957_v31  ;;  %v927_v0 = vand.u32 4294967288, %v2936_v41  ;;  %v782_v35 = vcvt.f32.s32 %v781_v6  ;;  %1054 = vmin.xlane.f32.xlu1 %v2938_v60  ;;  %v766_v30 = vpop.xlane.xlu0 %765  ;;  %v2957_v17 = vsel %vm908_vm7, 2139095040, %v2634_v51 }
 0x226   : > { %2375 = vrcp.f32 %v956_v61  ;;  %vm911_vm8 = vcmp.eq.s32.totalorder %v2652_v1, %v2936_v41  ;;  %v926_v62 = vand.u32 4294967288, %v2943_v53  ;;  %v2962_v19 = vcvt.s32.f32 %v1036_v45 }
 0x227   : > { %v959_v12 = vmax.f32 %v927_v0, 1e-10  ;;  %v2964_v22 = vadd.s32 %v784_v27, %v782_v35  ;;  %v767_v52 = vcvt.f32.s32 %v766_v30  ;;  %v2968_v3 = vsel %vm665_vm2, %v2949_v54, 2147483647 }
 0x228   : > { %vm910_vm9 = vcmp.eq.s32.totalorder %v2658_v8, %v2943_v53  ;;  %v958_v26 = vmax.f32 %v926_v62, 1e-10  ;;  %1039 = vmin.xlane.f32.xlu0 %v2962_v19  ;;  %v811_v56 = vpop.xlane.xlu1 %810  ;;  %v1081_v36 = vshra.s32 %v2968_v3, 16  ;;  %v2976_v14 = vsel %vm665_vm2, %v2957_v17, 2147483647 }
 0x229   : > { %2377 = vrcp.f32 %v959_v12  ;;  %v929_v27 = vand.u32 4294967288, %v2964_v22  ;;  %v2980_v32 = vadd.s32 %v2878_v38, %v767_v52  ;;  %v796_v47 = vpop.xlane.xlu0 %795  ;;  %v2986_v43 = vsel %vm911_vm8, 2139095040, %v2652_v1 }
 0x22a   : > { %2379 = vrcp.f32 %v958_v26  ;;  %v812_v37 = vcvt.f32.s32 %v811_v56  ;;  %v2988_v25 = vcvt.s32.f32 %v1081_v36  ;;  %v1066_v50 = vshra.s32 %v2976_v14, 16 }
 0x22b   : > { %v2370_v2 = vpop.eup %2369  ;;  %vm913_vm10 = vcmp.eq.s32.totalorder %v2676_v23, %v2964_v22  ;;  %v961_v31 = vmax.f32 %v929_v27, 1e-10  ;;  %v928_v38 = vand.u32 4294967288, %v2980_v32  ;;  %v797_v45 = vcvt.f32.s32 %v796_v47 }
 0x22c   : > { %v2372_v61 = vpop.eup %2371  ;;  %v2997_v6 = vsel %vm907_vm4, %v2370_v2, 0.0  ;;  %v3000_v0 = vadd.s32 %v2880_v44, %v812_v37  ;;  %1084 = vmin.xlane.f32.xlu1 %v2988_v25  ;;  %v3003_v35 = vcvt.s32.f32 %v1066_v50  ;;  %v841_v30 = vpop.xlane.xlu1 %840  ;;  %v3007_v62 = vsel %vm665_vm2, %v2986_v43, 2147483647 }
 0x22d   : > { %v3012_v12 = vsel %vm906_vm5, %v2372_v61, 0.0  ;;  %2381 = vrcp.f32 %v961_v31  ;;  %v960_v29 = vmax.f32 %v928_v38, 1e-10  ;;  %v3015_v42 = vadd.s32 %v2882_v39, %v797_v45  ;;  %v826_v44 = vpop.xlane.xlu0 %825 }
 0x22e   : > { %vm912_vm11 = vcmp.eq.s32.totalorder %v2682_v28, %v2980_v32  ;;  %v931_v52 = vand.u32 4294967288, %v3000_v0  ;;  %1069 = vmin.xlane.f32.xlu0 %v3003_v35  ;;  %v842_v26 = vcvt.f32.s32 %v841_v30  ;;  %v1111_v56 = vshra.s32 %v3007_v62, 16 }
 0x22f   : > { %v2374_v36 = vpop.eup %2373  ;;  %2383 = vrcp.f32 %v960_v29  ;;  %vm915_vm12 = vcmp.eq.s32.totalorder %v2700_v48, %v3000_v0  ;;  %v930_v33 = vand.u32 4294967288, %v3015_v42  ;;  %v3029_v39 = vsel %vm910_vm9, 2139095040, %v2658_v8 }
 0x230   : > { %v2376_v16 = vpop.eup %2375  ;;  %v3034_v27 = vsel %vm909_vm6, %v2374_v36, 0.0  ;;  %v963_v47 = vmax.f32 %v931_v52, 1e-10  ;;  %v3037_v37 = vadd.s32 %v2884_v58, %v842_v26  ;;  %v3039_v50 = vcvt.s32.f32 %v1111_v56  ;;  %v871_v2 = vpop.xlane.xlu1 %870 }
 0x231   : > { %v3044_v31 = vsel %vm908_vm7, %v2376_v16, 0.0  ;;  %v962_v38 = vmax.f32 %v930_v33, 1e-10  ;;  %v3048_v45 = vsel %vm665_vm2, %v3029_v39, 2147483647  ;;  %v827_v46 = vcvt.f32.s32 %v826_v44  ;;  %v856_v29 = vpop.xlane.xlu0 %855 }
 0x232   : > { %2385 = vrcp.f32 %v963_v47  ;;  %vm914_vm13 = vcmp.eq.s32.totalorder %v2706_v55, %v3015_v42  ;;  %v933_v58 = vand.u32 4294967288, %v3037_v37  ;;  %1114 = vmin.xlane.f32.xlu1 %v3039_v50  ;;  %v1096_v18 = vshra.s32 %v3048_v45, 16 }
 0x233   : > { %v2378_v61 = vpop.eup %2377  ;;  %2387 = vrcp.f32 %v962_v38  ;;  %v3056_v51 = vadd.s32 %v2886_v63, %v827_v46  ;;  %v872_v40 = vcvt.f32.s32 %v871_v2  ;;  %v3062_v30 = vsel %vm913_vm10, 2139095040, %v2676_v23 }
 0x234   : > { %v2380_v44 = vpop.eup %2379  ;;  %v3067_v52 = vsel %vm911_vm8, %v2378_v61, 0.0  ;;  %vm917_vm14 = vcmp.eq.s32.totalorder %v2724_v13, %v3037_v37  ;;  %v965_v26 = vmax.f32 %v933_v58, 1e-10  ;;  %v3071_v63 = vcvt.s32.f32 %v1096_v18  ;;  %v901_v16 = vpop.xlane.xlu1 %900 }
 0x235   : > { %v3075_v56 = vsel %vm665_vm2, %v3062_v30, 2147483647  ;;  %v3080_v36 = vsel %vm910_vm9, %v2380_v44, 0.0  ;;  %vm916_vm15 = vcmp.eq.s32.totalorder %v2730_v24, %v3056_v51  ;;  %v932_v1 = vand.u32 4294967288, %v3056_v51  ;;  %v886_v23 = vpop.xlane.xlu0 %885 }
 0x236   : > { %v3086_v41 = vadd.s32 %v2890_v34, %v872_v40  ;;  %2389 = vrcp.f32 %v965_v26  ;;  %1099 = vmin.xlane.f32.xlu0 %v3071_v63  ;;  %v1141_v33 = vshra.s32 %v3075_v56, 16  ;;  %v3094_v8 = vsel %vm912_vm11, 2139095040, %v2682_v28 }
 0x237   : > { %v857_v53 = vcvt.f32.s32 %v856_v29  ;;  %v2382_v47 = vpop.eup %2381  ;;  %v964_v2 = vmax.f32 %v932_v1, 1e-10  ;;  %v3101_v38 = vsel %vm665_vm2, %v3094_v8, 2147483647  ;;  %v3118_v44 = vsel %vm915_vm12, 2139095040, %v2700_v48 }
 0x238   : > { %vm919_vm0 = vcmp.eq.s32.totalorder %v2748_v5, %v3086_v41  ;;  %v935_v34 = vand.u32 4294967288, %v3086_v41  ;;  %v3106_v46 = vsel %vm913_vm10, %v2382_v47, 0.0  ;;  %v3108_v58 = vcvt.s32.f32 %v1141_v33 }
 0x239   : > { %v1126_v18 = vshra.s32 %v3101_v38, 16  ;;  %v3112_v61 = vadd.s32 %v2892_v57, %v857_v53  ;;  %v2384_v40 = vpop.eup %2383  ;;  %2391 = vrcp.f32 %v964_v2  ;;  %v902_v26 = vcvt.f32.s32 %v901_v16 }
 0x23a   : > { %v967_v29 = vmax.f32 %v935_v34, 1e-10  ;;  %v3123_v22 = vsel %vm912_vm11, %v2384_v40, 0.0  ;;  %1144 = vmin.xlane.f32.xlu1 %v3108_v58  ;;  %v3133_v33 = vsel %vm665_vm2, %v3118_v44, 2147483647  ;;  %v3142_v28 = vsel %vm914_vm13, 2139095040, %v2706_v55 }
 0x23b   : > { %4020 = vst [vmem:[#allocation2_spill] sm:$0xff] %v3123_v22  ;;  %v3126_v57 = vcvt.s32.f32 %v1126_v18  ;;  %vm918_vm1 = vcmp.eq.s32.totalorder %v2753_v49, %v3112_v61  ;;  %v934_v1 = vand.u32 4294967288, %v3112_v61  ;;  %v3136_v53 = vadd.s32 %v2897_v59, %v902_v26 }
 0x23c   : > { %2393 = vrcp.f32 %v967_v29  ;;  %v2386_v32 = vpop.eup %2385  ;;  %v1171_v47 = vshra.s32 %v3133_v33, 16  ;;  %v3148_v2 = vsel %vm665_vm2, %v3142_v28, 2147483647  ;;  %v887_v34 = vcvt.f32.s32 %v886_v23 }
 0x23d   : > { %1129 = vmin.xlane.f32.xlu0 %v3126_v57  ;;  %v966_v16 = vmax.f32 %v934_v1, 1e-10  ;;  %v2388_v18 = vpop.eup %2387  ;;  %v3153_v59 = vsel %vm915_vm12, %v2386_v32, 0.0  ;;  %vm921_vm3 = vcmp.eq.s32.totalorder %v2770_v4, %v3136_v53  ;;  %v937_v40 = vand.u32 4294967288, %v3136_v53 }
 0x23e   : > { %4021 = vst [vmem:[#allocation3_spill] sm:$0xff] %v3153_v59  ;;  %v1156_v29 = vshra.s32 %v3148_v2, 16  ;;  %v3162_v26 = vsel %vm914_vm13, %v2388_v18, 0.0  ;;  %v3164_v23 = vcvt.s32.f32 %v1171_v47  ;;  %v890_v1 = vadd.s32 %v2941_v10, %v887_v34 }
 0x23f   : > { %4022 = vst [vmem:[#allocation4_spill] sm:$0xff] %v3162_v26  ;;  %2395 = vrcp.f32 %v966_v16  ;;  %v969_v48 = vmax.f32 %v937_v40, 1e-10  ;;  %v3173_v32 = vsel %vm917_vm14, 2139095040, %v2724_v13  ;;  %v3179_v55 = vsel %vm916_vm15, 2139095040, %v2730_v24 }
 0x240   : > { %v3167_v0 = vcvt.s32.f32 %v1156_v29  ;;  %4023 = vst [vmem:[#allocation5_spill] sm:$0xff] %v3173_v32  ;;  %4024 = vst [vmem:[#allocation6_spill] sm:$0xff] %v3179_v55  ;;  %v2390_v42 = vpop.eup %2389  ;;  %1174 = vmin.xlane.f32.xlu1 %v3164_v23  ;;  %vm920_vm4 = vcmp.eq.s32.totalorder %v2775_v7, %v890_v1  ;;  %v936_v10 = vand.u32 4294967288, %v890_v1  ;;  %v3185_v16 = vsel %vm665_vm2, %v3173_v32, 2147483647 }
 0x241   : > { %v3189_v47 = vsel %vm665_vm2, %v3179_v55, 2147483647  ;;  %v3194_v34 = vsel %vm917_vm14, %v2390_v42, 0.0  ;;  %2397 = vrcp.f32 %v969_v48  ;;  %v1201_v18 = vshra.s32 %v3185_v16, 16 }
 0x242   : > { %4025 = vst [vmem:[#allocation7_spill] sm:$0xff] %v3194_v34  ;;  %1159 = vmin.xlane.f32.xlu0 %v3167_v0  ;;  %v1186_v40 = vshra.s32 %v3189_v47, 16  ;;  %v968_v29 = vmax.f32 %v936_v10, 1e-10  ;;  %v3203_v11 = vsel %vm919_vm0, 2139095040, %v2748_v5  ;;  %v3209_v13 = vsel %vm918_vm1, 2139095040, %v2753_v49 }
 0x243   : > { %4026 = vst [vmem:[#allocation8_spill] sm:$0xff] %v3203_v11  ;;  %4027 = vst [vmem:[#allocation9_spill] sm:$0xff] %v3209_v13  ;;  %v3215_v37 = vsel %vm921_vm3, 2139095040, %v2770_v4  ;;  %v2392_v48 = vpop.eup %2391  ;;  %v3217_v42 = vcvt.s32.f32 %v1201_v18  ;;  %v3223_v34 = vsel %vm665_vm2, %v3203_v11, 2147483647  ;;  %v3245_v24 = vsel %vm920_vm4, 2139095040, %v2775_v7 }
 0x244   : > { %4028 = vst [vmem:[#allocation10_spill] sm:$0xff] %v3215_v37  ;;  %v3219_v10 = vcvt.s32.f32 %v1186_v40  ;;  %v3227_v26 = vsel %vm665_vm2, %v3209_v13, 2147483647  ;;  %v3232_v59 = vsel %vm916_vm15, %v2392_v48, 0.0  ;;  %2399 = vrcp.f32 %v968_v29 }
 0x245   : > { %4029 = vst [vmem:[#allocation11_spill] sm:$0xff] %v3232_v59  ;;  %v1231_v55 = vshra.s32 %v3223_v34, 16  ;;  %v1216_v18 = vshra.s32 %v3227_v26, 16  ;;  %1204 = vmin.xlane.f32.xlu1 %v3217_v42  ;;  %v3240_v11 = vsel %vm665_vm2, %v3215_v37, 2147483647 }
 0x246   : > { %v2394_v40 = vpop.eup %2393  ;;  %1189 = vmin.xlane.f32.xlu0 %v3219_v10  ;;  %v1261_v59 = vshra.s32 %v3240_v11, 16  ;;  %v3259_v37 = vsel %vm665_vm2, %v3245_v24, 2147483647 }
 0x247   : > { %v3250_v51 = vsel %vm919_vm0, %v2394_v40, 0.0  ;;  %v3252_v29 = vcvt.s32.f32 %v1231_v55  ;;  %v3254_v48 = vcvt.s32.f32 %v1216_v18  ;;  %v1246_v22 = vshra.s32 %v3259_v37, 16 }
 0x248   : > { %v3269_v5 = vcvt.s32.f32 %v1261_v59  ;;  %v1050_v59 = vand.u32 65535, %v2915_v9  ;;  %v1065_v9 = vand.u32 65535, %v2976_v14 }
 0x249   : > { %v2396_v13 = vpop.eup %2395  ;;  %1234 = vmin.xlane.f32.xlu1 %v3252_v29  ;;  %v3271_v41 = vcvt.s32.f32 %v1246_v22  ;;  %v1035_v22 = vand.u32 65535, %v2928_v21 }
 0x24a   : > { %v3265_v32 = vsel %vm918_vm1, %v2396_v13, 0.0  ;;  %1219 = vmin.xlane.f32.xlu0 %v3254_v48  ;;  %v1052_v40 = vcvt.s32.f32 %v1050_v59  ;;  %v1067_v59 = vcvt.s32.f32 %v1065_v9 }
 0x24b   : > { %v2398_v55 = vpop.eup %2397 }
 0x24c   : > { %v3276_v18 = vsel %vm921_vm3, %v2398_v55, 0.0  ;;  %v1037_v55 = vcvt.s32.f32 %v1035_v22  ;;  %v1110_v22 = vand.u32 65535, %v3007_v62  ;;  %v1140_v62 = vand.u32 65535, %v3075_v56 }
 0x24d   : > { %4030 = vst [vmem:[#allocation12_spill] sm:$0xff] %v3276_v18  ;;  %1264 = vmin.xlane.f32.xlu1 %v3269_v5  ;;  %v1080_v18 = vand.u32 65535, %v2968_v3 }
 0x24e   : > { %1249 = vmin.xlane.f32.xlu0 %v3271_v41  ;;  %v2400_v49 = vpop.eup %2399  ;;  %v1112_v14 = vcvt.s32.f32 %v1110_v22 }
 0x24f   : > { %v3282_v61 = vsel %vm920_vm4, %v2400_v49, 0.0  ;;  %v1082_v1 = vcvt.s32.f32 %v1080_v18  ;;  %v1095_v18 = vand.u32 65535, %v3048_v45  ;;  %v1142_v45 = vcvt.s32.f32 %v1140_v62 }
 0x250   : > { %v1215_v62 = vand.u32 65535, %v3227_v26  ;;  %v1245_v26 = vand.u32 65535, %v3259_v37 }
 0x2b2   : > { %v3286_v13 = vpop.xlane.xlu1 %1054 }
 0x2b3   : > { %vm1056_vm5 = vcmp.eq.f32.partialorder %v2938_v60, %v3286_v13 }
 0x2b4   : > { %v1057_v4 = vsel %vm1056_vm5, %v1052_v40, inf }
 0x2b5   : > { %v3290_v53 = vpop.xlane.xlu0 %1039  ;;  %1058 = vmin.xlane.f32.xlu1 %v1057_v4  ;;  %v1097_v4 = vcvt.s32.f32 %v1095_v18 }
 0x2b6   : > { %vm1041_vm6 = vcmp.eq.f32.partialorder %v2962_v19, %v3290_v53 }
 0x2b7   : > { %v1042_v7 = vsel %vm1041_vm6, %v1037_v55, inf  ;;  %v1125_v55 = vand.u32 65535, %v3101_v38 }
 0x2b8   : > { %1043 = vmin.xlane.f32.xlu0 %v1042_v7 }
 0x2b9   : > { %v3296_v21 = vpop.xlane.xlu1 %1084 }
 0x2ba   : > { %vm1086_vm7 = vcmp.eq.f32.partialorder %v2988_v25, %v3296_v21 }
 0x2bb   : > { %v3300_v60 = vpop.xlane.xlu0 %1069  ;;  %v1087_v49 = vsel %vm1086_vm7, %v1082_v1, inf  ;;  %v1127_v1 = vcvt.s32.f32 %v1125_v55 }
 0x2bc   : > { %1088 = vmin.xlane.f32.xlu1 %v1087_v49  ;;  %vm1071_vm8 = vcmp.eq.f32.partialorder %v3003_v35, %v3300_v60  ;;  %v1170_v49 = vand.u32 65535, %v3133_v33  ;;  %v1185_v33 = vand.u32 65535, %v3189_v47 }
 0x2bd   : > { %v1072_v19 = vsel %vm1071_vm8, %v1067_v59, inf }
 0x2be   : > { %1073 = vmin.xlane.f32.xlu0 %v1072_v19  ;;  %v1172_v59 = vcvt.s32.f32 %v1170_v49  ;;  %v1200_v19 = vand.u32 65535, %v3185_v16 }
 0x2bf   : > { %v3305_v3 = vpop.xlane.xlu1 %1114 }
 0x2c0   : > { %vm1116_vm9 = vcmp.eq.f32.partialorder %v3039_v50, %v3305_v3 }
 0x2c1   : > { %v1117_v25 = vsel %vm1116_vm9, %v1112_v14, inf }
 0x2c2   : > { %1118 = vmin.xlane.f32.xlu1 %v1117_v25  ;;  %v1202_v25 = vcvt.s32.f32 %v1200_v19  ;;  %v1091_v19 = vcvt.f32.s32 %v3296_v21  ;;  %v1121_v21 = vcvt.f32.s32 %v3305_v3 }
 0x2c3   : > { %v3310_v40 = vpop.xlane.xlu0 %1099 }
 0x2c4   : > { %vm1101_vm10 = vcmp.eq.f32.partialorder %v3071_v63, %v3310_v40  ;;  %v1155_v63 = vand.u32 65535, %v3148_v2 }
 0x2c5   : > { %v1102_v35 = vsel %vm1101_vm10, %v1097_v4, inf  ;;  %v1187_v4 = vcvt.s32.f32 %v1185_v33 }
 0x2c6   : > { %1103 = vmin.xlane.f32.xlu0 %v1102_v35 }
 0x2c7   : > { %v3316_v7 = vpop.xlane.xlu1 %1144 }
 0x2c8   : > { %vm1146_vm11 = vcmp.eq.f32.partialorder %v3108_v58, %v3316_v7  ;;  %v1157_v58 = vcvt.s32.f32 %v1155_v63  ;;  %v1247_v63 = vcvt.s32.f32 %v1245_v26 }
 0x2c9   : > { %v1147_v9 = vsel %vm1146_vm11, %v1142_v45, inf  ;;  %v1217_v45 = vcvt.s32.f32 %v1215_v62 }
 0x2ca   : > { %v3320_v50 = vpop.xlane.xlu0 %1129  ;;  %1148 = vmin.xlane.f32.xlu1 %v1147_v9 }
 0x2cb   : > { %vm1131_vm12 = vcmp.eq.f32.partialorder %v3126_v57, %v3320_v50 }
 0x2cc   : > { %v1132_v56 = vsel %vm1131_vm12, %v1127_v1, inf }
 0x2cd   : > { %1133 = vmin.xlane.f32.xlu0 %v1132_v56  ;;  %v3326_v38 = vpop.xlane.xlu1 %1174 }
 0x2ce   : > { %vm1176_vm13 = vcmp.eq.f32.partialorder %v3164_v23, %v3326_v38  ;;  %v1230_v23 = vand.u32 65535, %v3223_v34  ;;  %v1260_v34 = vand.u32 65535, %v3240_v11 }
 0x2cf   : > { %v3328_v22 = vpop.xlane.xlu0 %1159  ;;  %v1177_v14 = vsel %vm1176_vm13, %v1172_v59, inf }
 0x2d0   : > { %vm1161_vm14 = vcmp.eq.f32.partialorder %v3167_v0, %v3328_v22  ;;  %1178 = vmin.xlane.f32.xlu1 %v1177_v14  ;;  %v1232_v55 = vcvt.s32.f32 %v1230_v23  ;;  %v1262_v49 = vcvt.s32.f32 %v1260_v34  ;;  %v1106_v23 = vcvt.f32.s32 %v3310_v40 }
 0x2d1   : > { %v1162_v57 = vsel %vm1161_vm14, %v1157_v58, inf }
 0x2d2   : > { %1163 = vmin.xlane.f32.xlu0 %v1162_v57  ;;  %v3336_v2 = vpop.xlane.xlu1 %1204 }
 0x2d3   : > { %v3338_v18 = vpop.xlane.xlu0 %1189  ;;  %vm1206_vm15 = vcmp.eq.f32.partialorder %v3217_v42, %v3336_v2 }
 0x2d4   : > { %vm1191_vm0 = vcmp.eq.f32.partialorder %v3219_v10, %v3338_v18  ;;  %v1207_v0 = vsel %vm1206_vm15, %v1202_v25, inf }
 0x2d5   : > { %v1192_v16 = vsel %vm1191_vm0, %v1187_v4, inf  ;;  %1208 = vmin.xlane.f32.xlu1 %v1207_v0 }
 0x2d6   : > { %1193 = vmin.xlane.f32.xlu0 %v1192_v16  ;;  %v3346_v47 = vpop.xlane.xlu1 %1234 }
 0x2d7   : > { %v3348_v35 = vpop.xlane.xlu0 %1219  ;;  %vm1236_vm1 = vcmp.eq.f32.partialorder %v3252_v29, %v3346_v47  ;;  %v1061_v29 = vcvt.f32.s32 %v3286_v13  ;;  %v1092_v13 = vshll.u32 %v1091_v19, 16 }
 0x2d8   : > { %vm1221_vm3 = vcmp.eq.f32.partialorder %v3254_v48, %v3348_v35  ;;  %v1237_v42 = vsel %vm1236_vm1, %v1232_v55, inf  ;;  %v1046_v48 = vcvt.f32.s32 %v3290_v53 }
 0x2d9   : > { %v1222_v10 = vsel %vm1221_vm3, %v1217_v45, inf  ;;  %1238 = vmin.xlane.f32.xlu1 %v1237_v42  ;;  %v1062_v59 = vshll.u32 %v1061_v29, 16 }
 0x2da   : > { %1223 = vmin.xlane.f32.xlu0 %v1222_v10  ;;  %v3356_v9 = vpop.xlane.xlu1 %1264 }
 0x2db   : > { %v3358_v1 = vpop.xlane.xlu0 %1249  ;;  %vm1266_vm4 = vcmp.eq.f32.partialorder %v3269_v5, %v3356_v9  ;;  %v1047_v5 = vshll.u32 %v1046_v48, 16 }
 0x2dc   : > { %vm1251_vm5 = vcmp.eq.f32.partialorder %v3271_v41, %v3358_v1  ;;  %v1267_v11 = vsel %vm1266_vm4, %v1262_v49, inf  ;;  %v1076_v41 = vcvt.f32.s32 %v3300_v60 }
 0x2dd   : > { %v1252_v37 = vsel %vm1251_vm5, %v1247_v63, inf  ;;  %1268 = vmin.xlane.f32.xlu1 %v1267_v11  ;;  %v1122_v63 = vshll.u32 %v1121_v21, 16  ;;  %v1107_v11 = vshll.u32 %v1106_v23, 16 }
 0x2de   : > { %1253 = vmin.xlane.f32.xlu0 %v1252_v37  ;;  %v1077_v34 = vshll.u32 %v1076_v41, 16 }
 0x342   : > { %v1059_v56 = vpop.xlane.xlu1 %1058 }
 0x343   : > { %v1060_v58 = vcvt.f32.s32 %v1059_v56  ;;  %v1151_v56 = vcvt.f32.s32 %v3316_v7  ;;  %v1181_v7 = vcvt.f32.s32 %v3326_v38 }
 0x345   : > { %v3367_v33 = vadd.s32 %v1062_v59, %v1060_v58  ;;  %v1044_v14 = vpop.xlane.xlu0 %1043  ;;  %v1136_v59 = vcvt.f32.s32 %v3320_v50 }
 0x346   : > { %v1045_v57 = vcvt.f32.s32 %v1044_v14 }
 0x347   : > { %vm1275_vm6 = vcmp.eq.s32.totalorder %v2909_v15, %v3367_v33  ;;  %v1291_v25 = vand.u32 4294967288, %v3367_v33  ;;  %v1137_v38 = vshll.u32 %v1136_v59, 16 }
 0x348   : > { %v3373_v4 = vadd.s32 %v1047_v5, %v1045_v57  ;;  %v3379_v53 = vsel %vm1275_vm6, 2139095040, %v2909_v15 }
 0x349   : > { %v1323_v62 = vmax.f32 %v1291_v25, 1e-10  ;;  %v1089_v60 = vpop.xlane.xlu1 %1088  ;;  %v3385_v0 = vsel %vm665_vm2, %v3379_v53, 2147483647 }
 0x34a   : > { %vm1274_vm7 = vcmp.eq.s32.totalorder %v2921_v20, %v3373_v4  ;;  %v1290_v16 = vand.u32 4294967288, %v3373_v4  ;;  %v1090_v55 = vcvt.f32.s32 %v1089_v60  ;;  %v1419_v45 = vshra.s32 %v3385_v0, 16 }
 0x34b   : > { %2401 = vrcp.f32 %v1323_v62  ;;  %v1074_v26 = vpop.xlane.xlu0 %1073  ;;  %v3395_v3 = vsel %vm1274_vm7, 2139095040, %v2921_v20  ;;  %v1152_v60 = vshll.u32 %v1151_v56, 16  ;;  %v1196_v4 = vcvt.f32.s32 %v3338_v18 }
 0x34c   : > { %v1322_v40 = vmax.f32 %v1290_v16, 1e-10  ;;  %v3397_v42 = vadd.s32 %v1092_v13, %v1090_v55  ;;  %v1075_v10 = vcvt.f32.s32 %v1074_v26  ;;  %v3399_v49 = vcvt.s32.f32 %v1419_v45 }
 0x34d   : > { %v3403_v37 = vsel %vm665_vm2, %v3395_v3, 2147483647  ;;  %v1166_v16 = vcvt.f32.s32 %v3328_v22 }
 0x34e   : > { %2403 = vrcp.f32 %v1322_v40  ;;  %vm1277_vm8 = vcmp.eq.s32.totalorder %v2949_v54, %v3397_v42  ;;  %v1293_v29 = vand.u32 4294967288, %v3397_v42  ;;  %v3408_v48 = vadd.s32 %v1077_v34, %v1075_v10  ;;  %1422 = vmin.xlane.f32.xlu1 %v3399_v49 }
 0x34f   : > { %v1119_v58 = vpop.xlane.xlu1 %1118  ;;  %v1404_v19 = vshra.s32 %v3403_v37, 16  ;;  %v3418_v14 = vsel %vm1277_vm8, 2139095040, %v2949_v54  ;;  %v1182_v10 = vshll.u32 %v1181_v7, 16 }
 0x350   : > { %v1325_v5 = vmax.f32 %v1293_v29, 1e-10  ;;  %vm1276_vm9 = vcmp.eq.s32.totalorder %v2957_v17, %v3408_v48  ;;  %v1292_v57 = vand.u32 4294967288, %v3408_v48  ;;  %v1120_v41 = vcvt.f32.s32 %v1119_v58 }
 0x351   : > { %v3424_v25 = vcvt.s32.f32 %v1404_v19  ;;  %v3428_v50 = vsel %vm665_vm2, %v3418_v14, 2147483647  ;;  %v3434_v13 = vsel %vm1276_vm9, 2139095040, %v2957_v17 }
 0x352   : > { %2405 = vrcp.f32 %v1325_v5  ;;  %v1324_v21 = vmax.f32 %v1292_v57, 1e-10  ;;  %v3436_v23 = vadd.s32 %v1122_v63, %v1120_v41  ;;  %v1449_v62 = vshra.s32 %v3428_v50, 16 }
 0x353   : > { %v1104_v55 = vpop.xlane.xlu0 %1103  ;;  %1407 = vmin.xlane.f32.xlu0 %v3424_v25  ;;  %v3443_v45 = vsel %vm665_vm2, %v3434_v13, 2147483647  ;;  %v1211_v5 = vcvt.f32.s32 %v3336_v2 }
 0x354   : > { %2407 = vrcp.f32 %v1324_v21  ;;  %vm1279_vm10 = vcmp.eq.s32.totalorder %v2986_v43, %v3436_v23  ;;  %v1295_v34 = vand.u32 4294967288, %v3436_v23  ;;  %v1105_v26 = vcvt.f32.s32 %v1104_v55 }
 0x355   : > { %v2402_v40 = vpop.eup %2401  ;;  %v3448_v63 = vcvt.s32.f32 %v1449_v62  ;;  %v1434_v22 = vshra.s32 %v3443_v45, 16  ;;  %v3455_v29 = vsel %vm1279_vm10, 2139095040, %v2986_v43  ;;  %v1167_v62 = vshll.u32 %v1166_v16, 16 }
 0x356   : > { %v1355_v56 = vsel %vm1275_vm6, %v2402_v40, 0.0  ;;  %v1327_v59 = vmax.f32 %v1295_v34, 1e-10  ;;  %v3460_v58 = vadd.s32 %v1107_v11, %v1105_v26  ;;  %v3464_v19 = vsel %vm665_vm2, %v3455_v29, 2147483647 }
 0x357   : > { %v3468_v57 = vadd.f32 %v1355_v56, %v2997_v6  ;;  %v1149_v41 = vpop.xlane.xlu1 %1148  ;;  %1452 = vmin.xlane.f32.xlu1 %v3448_v63  ;;  %v3471_v7 = vcvt.s32.f32 %v1434_v22  ;;  %v1479_v15 = vshra.s32 %v3464_v19, 16  ;;  %v1212_v20 = vshll.u32 %v1211_v5, 16 }
 0x358   : > { %v2404_v33 = vpop.eup %2403  ;;  %2409 = vrcp.f32 %v1327_v59  ;;  %vm1278_vm11 = vcmp.eq.s32.totalorder %v3029_v39, %v3460_v58  ;;  %v1294_v11 = vand.u32 4294967288, %v3460_v58  ;;  %v1150_v21 = vcvt.f32.s32 %v1149_v41 }
 0x359   : > { %v1354_v6 = vsel %vm1274_vm7, %v2404_v33, 0.0  ;;  %1437 = vmin.xlane.f32.xlu0 %v3471_v7  ;;  %v3481_v55 = vcvt.s32.f32 %v1479_v15  ;;  %v3487_v34 = vsel %vm1278_vm11, 2139095040, %v3029_v39  ;;  %v1241_v56 = vcvt.f32.s32 %v3346_v47 }
 0x35a   : > { %v1134_v2 = vpop.xlane.xlu0 %1133  ;;  %4031 = vst [vmem:[#allocation13_spill] sm:$0xff] %v3487_v34  ;;  %v3490_v26 = vadd.f32 %v1354_v6, %v3012_v12  ;;  %v1326_v40 = vmax.f32 %v1294_v11, 1e-10  ;;  %v3492_v16 = vadd.s32 %v1152_v60, %v1150_v21  ;;  %v3499_v59 = vsel %vm665_vm2, %v3487_v34, 2147483647 }
 0x35b   : > { %v1135_v22 = vcvt.f32.s32 %v1134_v2  ;;  %1482 = vmin.xlane.f32.xlu1 %v3481_v55  ;;  %v1226_v5 = vcvt.f32.s32 %v3348_v35  ;;  %v1464_v15 = vshra.s32 %v3499_v59, 16 }
 0x35c   : > { %v2406_v41 = vpop.eup %2405  ;;  %2411 = vrcp.f32 %v1326_v40  ;;  %vm1281_vm12 = vcmp.eq.s32.totalorder %v3062_v30, %v3492_v16  ;;  %v1297_v12 = vand.u32 4294967288, %v3492_v16 }
 0x35d   : > { %v3504_v60 = vadd.s32 %v1137_v38, %v1135_v22  ;;  %v1357_v18 = vsel %vm1277_vm8, %v2406_v41, 0.0  ;;  %v1179_v47 = vpop.xlane.xlu1 %1178  ;;  %v3515_v33 = vsel %vm1281_vm12, 2139095040, %v3062_v30  ;;  %v3526_v40 = vcvt.s32.f32 %v1464_v15 }
 0x35e   : > { %v2408_v11 = vpop.eup %2407  ;;  %v3518_v21 = vadd.f32 %v1357_v18, %v3034_v27  ;;  %v1329_v38 = vmax.f32 %v1297_v12, 1e-10  ;;  %v1180_v6 = vcvt.f32.s32 %v1179_v47  ;;  %v3533_v41 = vsel %vm665_vm2, %v3515_v33, 2147483647 }
 0x35f   : > { %vm1280_vm13 = vcmp.eq.s32.totalorder %v3094_v8, %v3504_v60  ;;  %v1296_v54 = vand.u32 4294967288, %v3504_v60  ;;  %v1164_v35 = vpop.xlane.xlu0 %1163  ;;  %v1356_v42 = vsel %vm1276_vm9, %v2408_v11, 0.0  ;;  %v1197_v12 = vshll.u32 %v1196_v4, 16  ;;  %1467 = vmin.xlane.f32.xlu0 %v3526_v40 }
 0x360   : > { %v1165_v2 = vcvt.f32.s32 %v1164_v35  ;;  %v3529_v22 = vadd.f32 %v1356_v42, %v3044_v31  ;;  %2413 = vrcp.f32 %v1329_v38  ;;  %v3535_v18 = vadd.s32 %v1182_v10, %v1180_v6 }
 0x361   : > { %v1328_v27 = vmax.f32 %v1296_v54, 1e-10  ;;  %v1509_v17 = vshra.s32 %v3533_v41, 16  ;;  %v1242_v47 = vshll.u32 %v1241_v56, 16  ;;  %v1227_v15 = vshll.u32 %v1226_v5, 16 }
 0x362   : > { %v3537_v34 = vadd.s32 %v1167_v62, %v1165_v2  ;;  %v2410_v48 = vpop.eup %2409  ;;  %v1209_v31 = vpop.xlane.xlu1 %1208  ;;  %v3545_v38 = vsel %vm1280_vm13, 2139095040, %v3094_v8  ;;  %v1271_v10 = vcvt.f32.s32 %v3356_v9  ;;  %vm1283_vm14 = vcmp.eq.s32.totalorder %v3118_v44, %v3535_v18 }
 0x363   : > { %2415 = vrcp.f32 %v1328_v27  ;;  %v1194_v11 = vpop.xlane.xlu0 %1193  ;;  %4032 = vst [vmem:[#allocation14_spill] sm:$0xff] %v3545_v38  ;;  %v1359_v62 = vsel %vm1279_vm10, %v2410_v48, 0.0  ;;  %v1299_v4 = vand.u32 4294967288, %v3535_v18  ;;  %v1210_v54 = vcvt.f32.s32 %v1209_v31 }
 0x364   : > { %v3555_v56 = vadd.f32 %v1359_v62, %v3067_v52  ;;  %v1298_v5 = vand.u32 4294967288, %v3537_v34  ;;  %v1195_v35 = vcvt.f32.s32 %v1194_v11  ;;  %v1256_v42 = vcvt.f32.s32 %v3358_v1 }
 0x365   : > { %v1331_v6 = vmax.f32 %v1299_v4, 1e-10  ;;  %v3559_v9 = vcvt.s32.f32 %v1509_v17  ;;  %v3563_v43 = vsel %vm665_vm2, %v3545_v38, 2147483647  ;;  %v3565_v27 = vadd.s32 %v1212_v20, %v1210_v54 }
 0x366   : > { %v2412_v23 = vpop.eup %2411  ;;  %v1330_v2 = vmax.f32 %v1298_v5, 1e-10  ;;  %v3567_v48 = vadd.s32 %v1197_v12, %v1195_v35  ;;  %v1239_v52 = vpop.xlane.xlu1 %1238  ;;  %v1494_v62 = vshra.s32 %v3563_v43, 16  ;;  %v3578_v20 = vsel %vm1283_vm14, 2139095040, %v3118_v44 }
 0x367   : > { %v1224_v31 = vpop.xlane.xlu0 %1223  ;;  %v1358_v1 = vsel %vm1278_vm11, %v2412_v23, 0.0  ;;  %2417 = vrcp.f32 %v1331_v6  ;;  %1512 = vmin.xlane.f32.xlu1 %v3559_v9  ;;  %v1240_v17 = vcvt.f32.s32 %v1239_v52  ;;  %4033 = vst [vmem:[#allocation15_spill] sm:$0xff] %v3578_v20  ;;  %vm1282_vm15 = vcmp.eq.s32.totalorder %v3142_v28, %v3537_v34 }
 0x368   : > { %v3581_v12 = vadd.f32 %v1358_v1, %v3080_v36  ;;  %2419 = vrcp.f32 %v1330_v2  ;;  %v1301_v39 = vand.u32 4294967288, %v3565_v27  ;;  %v1272_v58 = vshll.u32 %v1271_v10, 16 }
 0x369   : > { %v1300_v11 = vand.u32 4294967288, %v3567_v48  ;;  %v3587_v4 = vadd.s32 %v1242_v47, %v1240_v17  ;;  %v3589_v5 = vcvt.s32.f32 %v1494_v62  ;;  %v1257_v35 = vshll.u32 %v1256_v42, 16 }
 0x36a   : > { %v2414_v54 = vpop.eup %2413  ;;  %v1333_v6 = vmax.f32 %v1301_v39, 1e-10  ;;  %v1225_v23 = vcvt.f32.s32 %v1224_v31  ;;  %v3593_v36 = vsel %vm665_vm2, %v3578_v20, 2147483647  ;;  %v3604_v47 = vsel %vm1282_vm15, 2139095040, %v3142_v28  ;;  %v1269_v16 = vpop.xlane.xlu1 %1268  ;;  %v4036_v39 = vld [vmem:[#allocation5_spill] sm:$0xff] }
 0x36b   : > { %v1361_v2 = vsel %vm1281_vm12, %v2414_v54, 0.0  ;;  %v1332_v52 = vmax.f32 %v1300_v11, 1e-10  ;;  %v1303_v10 = vand.u32 4294967288, %v3587_v4  ;;  %1497 = vmin.xlane.f32.xlu0 %v3589_v5  ;;  %4034 = vst [vmem:[#allocation16_spill] sm:$0xff] %v3604_v47  ;;  %v1539_v30 = vshra.s32 %v3593_v36, 16  ;;  %v1254_v1 = vpop.xlane.xlu0 %1253 }
 0x36c   : > { %v3607_v62 = vadd.f32 %v1361_v2, %v3106_v46  ;;  %2421 = vrcp.f32 %v1333_v6  ;;  %v3609_v31 = vadd.s32 %v1227_v15, %v1225_v23  ;;  %vm1285_vm0 = vcmp.eq.s32.totalorder %v4036_v39, %v3565_v27  ;;  %v4037_v54 = vld [vmem:[#allocation2_spill] sm:$0xff]  ;;  %v4040_v2 = vld [vmem:[#allocation8_spill] sm:$0xff] }
 0x36d   : > { %v2416_v42 = vpop.eup %2415  ;;  %2423 = vrcp.f32 %v1332_v52  ;;  %v1335_v11 = vmax.f32 %v1303_v10, 1e-10  ;;  %v4039_v46 = vld [vmem:[#allocation6_spill] sm:$0xff]  ;;  %v3623_v6 = vcvt.s32.f32 %v1539_v30  ;;  %v1270_v23 = vcvt.f32.s32 %v1269_v16 }
 0x36e   : > { %4035 = vst [vmem:[#allocation17_spill] sm:$0xff] %v3607_v62  ;;  %v1360_v17 = vsel %vm1280_vm13, %v2416_v42, 0.0  ;;  %vm1284_vm1 = vcmp.eq.s32.totalorder %v4039_v46, %v3567_v48  ;;  %v1302_v15 = vand.u32 4294967288, %v3609_v31  ;;  %v3627_v8 = vsel %vm665_vm2, %v3604_v47, 2147483647  ;;  %v4051_v62 = vld [vmem:[#allocation11_spill] sm:$0xff] }
 0x36f   : > { %v3618_v20 = vadd.f32 %v1360_v17, %v4037_v54  ;;  %2425 = vrcp.f32 %v1335_v11  ;;  %v1255_v60 = vcvt.f32.s32 %v1254_v1  ;;  %vm1287_vm3 = vcmp.eq.s32.totalorder %v4040_v2, %v3587_v4  ;;  %1542 = vmin.xlane.f32.xlu1 %v3623_v6 }
 0x370   : > { %v1334_v52 = vmax.f32 %v1302_v15, 1e-10  ;;  %v1524_v10 = vshra.s32 %v3627_v8, 16  ;;  %v3637_v42 = vsel %vm1285_vm0, 2139095040, %v4036_v39  ;;  %v1273_v16 = vadd.s32 %v1272_v58, %v1270_v23 }
 0x371   : > { %4038 = vst [vmem:[#allocation5_spill] sm:$0xff] %v3618_v20  ;;  %4041 = vst [vmem:[#allocation2_spill] sm:$0xff] %v3637_v42  ;;  %v2418_v30 = vpop.eup %2417  ;;  %v3639_v17 = vadd.s32 %v1257_v35, %v1255_v60  ;;  %v3643_v1 = vsel %vm665_vm2, %v3637_v42, 2147483647  ;;  %v3649_v11 = vsel %vm1284_vm1, 2139095040, %v4039_v46  ;;  %v4043_v35 = vld [vmem:[#allocation3_spill] sm:$0xff] }
 0x372   : > { %4042 = vst [vmem:[#allocation6_spill] sm:$0xff] %v3649_v11  ;;  %v2420_v54 = vpop.eup %2419  ;;  %v1363_v15 = vsel %vm1283_vm14, %v2418_v30, 0.0  ;;  %2427 = vrcp.f32 %v1334_v52  ;;  %v3654_v47 = vcvt.s32.f32 %v1524_v10  ;;  %v1569_v58 = vshra.s32 %v3643_v1, 16  ;;  %v4045_v20 = vld [vmem:[#allocation4_spill] sm:$0xff]  ;;  %v4047_v52 = vld [vmem:[#allocation9_spill] sm:$0xff] }
 0x373   : > { %v3658_v23 = vadd.f32 %v1363_v15, %v4043_v35  ;;  %v1362_v60 = vsel %vm1282_vm15, %v2420_v54, 0.0  ;;  %v1305_v42 = vand.u32 4294967288, %v1273_v16  ;;  %v1304_v44 = vand.u32 4294967288, %v3639_v17 }
 0x374   : > { %v3664_v38 = vadd.f32 %v1362_v60, %v4045_v20  ;;  %1527 = vmin.xlane.f32.xlu0 %v3654_v47  ;;  %v3668_v18 = vcvt.s32.f32 %v1569_v58  ;;  %vm1286_vm4 = vcmp.eq.s32.totalorder %v4047_v52, %v3609_v31  ;;  %v3674_v30 = vsel %vm665_vm2, %v3649_v11, 2147483647  ;;  %v4049_v20 = vld [vmem:[#allocation10_spill] sm:$0xff] }
 0x375   : > { %4044 = vst [vmem:[#allocation8_spill] sm:$0xff] %v3658_v23  ;;  %v1337_v10 = vmax.f32 %v1305_v42, 1e-10  ;;  %v3680_v28 = vsel %vm1287_vm3, 2139095040, %v4040_v2  ;;  %vm1289_vm5 = vcmp.eq.s32.totalorder %v4049_v20, %v1273_v16  ;;  %v1336_v54 = vmax.f32 %v1304_v44, 1e-10 }
 0x376   : > { %4046 = vst [vmem:[#allocation3_spill] sm:$0xff] %v3664_v38  ;;  %4048 = vst [vmem:[#allocation4_spill] sm:$0xff] %v3680_v28  ;;  %v2422_v34 = vpop.eup %2421  ;;  %1572 = vmin.xlane.f32.xlu1 %v3668_v18  ;;  %v1554_v15 = vshra.s32 %v3674_v30, 16  ;;  %v3687_v42 = vsel %vm665_vm2, %v3680_v28, 2147483647  ;;  %vm1288_vm6 = vcmp.eq.s32.totalorder %v3245_v24, %v3639_v17  ;;  %v4050_v44 = vld [vmem:[#allocation7_spill] sm:$0xff] }
 0x377   : > { %v2424_v58 = vpop.eup %2423  ;;  %v1365_v35 = vsel %vm1285_vm0, %v2422_v34, 0.0  ;;  %2429 = vrcp.f32 %v1337_v10  ;;  %v1599_v60 = vshra.s32 %v3687_v42, 16  ;;  %v3712_v10 = vsel %vm1286_vm4, 2139095040, %v4047_v52  ;;  %v4054_v52 = vld [vmem:[#allocation12_spill] sm:$0xff] }
 0x378   : > { %v3696_v11 = vadd.f32 %v1365_v35, %v4050_v44  ;;  %v1364_v38 = vsel %vm1284_vm1, %v2424_v58, 0.0  ;;  %2431 = vrcp.f32 %v1336_v54  ;;  %v3701_v28 = vcvt.s32.f32 %v1554_v15 }
 0x379   : > { %v2426_v23 = vpop.eup %2425  ;;  %v3704_v27 = vadd.f32 %v1364_v38, %v4051_v62  ;;  %v3706_v39 = vcvt.s32.f32 %v1599_v60  ;;  %v3717_v48 = vsel %vm1289_vm5, 2139095040, %v4049_v20  ;;  %v3725_v38 = vsel %vm665_vm2, %v3712_v10, 2147483647 }
 0x37a   : > { %4052 = vst [vmem:[#allocation9_spill] sm:$0xff] %v3717_v48  ;;  %v1367_v46 = vsel %vm1287_vm3, %v2426_v23, 0.0  ;;  %1557 = vmin.xlane.f32.xlu0 %v3701_v28  ;;  %v3729_v62 = vsel %vm665_vm2, %v3717_v48, 2147483647  ;;  %v3735_v34 = vsel %vm1288_vm6, 2139095040, %v3245_v24  ;;  %v1584_v4 = vshra.s32 %v3725_v38, 16 }
 0x37b   : > { %4053 = vst [vmem:[#allocation10_spill] sm:$0xff] %v3735_v34  ;;  %v3738_v54 = vadd.f32 %v1367_v46, %v3250_v51  ;;  %1602 = vmin.xlane.f32.xlu1 %v3706_v39  ;;  %v1629_v2 = vshra.s32 %v3729_v62, 16  ;;  %v3745_v15 = vsel %vm665_vm2, %v3735_v34, 2147483647  ;;  %v1403_v16 = vand.u32 65535, %v3403_v37 }
 0x37c   : > { %v2428_v23 = vpop.eup %2427  ;;  %v3750_v35 = vcvt.s32.f32 %v1584_v4  ;;  %v1614_v51 = vshra.s32 %v3745_v15, 16  ;;  %v1448_v24 = vand.u32 65535, %v3428_v50 }
 0x37d   : > { %v1366_v58 = vsel %vm1286_vm4, %v2428_v23, 0.0  ;;  %v3752_v60 = vcvt.s32.f32 %v1629_v2  ;;  %v1418_v23 = vand.u32 65535, %v3385_v0 }
 0x37e   : > { %v3756_v44 = vadd.f32 %v1366_v58, %v3265_v32  ;;  %1587 = vmin.xlane.f32.xlu0 %v3750_v35  ;;  %v3760_v46 = vcvt.s32.f32 %v1614_v51 }
 0x37f   : > { %1632 = vmin.xlane.f32.xlu1 %v3752_v60  ;;  %v1420_v51 = vcvt.s32.f32 %v1418_v23 }
 0x381   : > { %v2430_v34 = vpop.eup %2429 }
 0x382   : > { %v2432_v48 = vpop.eup %2431  ;;  %v1369_v31 = vsel %vm1289_vm5, %v2430_v34, 0.0  ;;  %1617 = vmin.xlane.f32.xlu0 %v3760_v46  ;;  %v1478_v34 = vand.u32 65535, %v3464_v19  ;;  %v1463_v19 = vand.u32 65535, %v3499_v59 }
 0x383   : > { %v3765_v4 = vadd.f32 %v1369_v31, %v4054_v52  ;;  %v1368_v2 = vsel %vm1288_vm6, %v2432_v48, 0.0  ;;  %v1405_v48 = vcvt.s32.f32 %v1403_v16 }
 0x384   : > { %v3772_v32 = vadd.f32 %v1368_v2, %v3282_v61  ;;  %v1433_v61 = vand.u32 65535, %v3443_v45  ;;  %v1480_v2 = vcvt.s32.f32 %v1478_v34 }
 0x386   : > { %v1435_v52 = vcvt.s32.f32 %v1433_v61 }
 0x3db   : > { %v3775_v58 = vpop.xlane.xlu1 %1422 }
 0x3dc   : > { %vm1424_vm7 = vcmp.eq.f32.partialorder %v3399_v49, %v3775_v58  ;;  %v1450_v49 = vcvt.s32.f32 %v1448_v24 }
 0x3dd   : > { %v1425_v20 = vsel %vm1424_vm7, %v1420_v51, inf  ;;  %v1465_v51 = vcvt.s32.f32 %v1463_v19 }
 0x3de   : > { %1426 = vmin.xlane.f32.xlu1 %v1425_v20  ;;  %v1493_v20 = vand.u32 65535, %v3563_v43 }
 0x3e0   : > { %v3781_v17 = vpop.xlane.xlu0 %1407  ;;  %v1495_v61 = vcvt.s32.f32 %v1493_v20 }
 0x3e1   : > { %vm1409_vm8 = vcmp.eq.f32.partialorder %v3424_v25, %v3781_v17 }
 0x3e2   : > { %v1410_v0 = vsel %vm1409_vm8, %v1405_v48, inf  ;;  %vm2492_vm8 = vmmov 0  }
 0x3e3   : > { %1411 = vmin.xlane.f32.xlu0 %v1410_v0  ;;  %v1538_v0 = vand.u32 65535, %v3593_v36 }
 0x3e4   : > { %v3787_v31 = vpop.xlane.xlu1 %1452 }
 0x3e5   : > { %vm1454_vm9 = vcmp.eq.f32.partialorder %v3448_v63, %v3787_v31  ;;  %v1540_v34 = vcvt.s32.f32 %v1538_v0 }
 0x3e6   : > { %v3791_v37 = vpop.xlane.xlu0 %1437  ;;  %v1455_v50 = vsel %vm1454_vm9, %v1450_v49, inf }
 0x3e7   : > { %vm1439_vm10 = vcmp.eq.f32.partialorder %v3471_v7, %v3791_v37  ;;  %1456 = vmin.xlane.f32.xlu1 %v1455_v50  ;;  %v1508_v7 = vand.u32 65535, %v3533_v41  ;;  %v1523_v41 = vand.u32 65535, %v3627_v8 }
 0x3e8   : > { %v3795_v25 = vpop.xlane.xlu1 %1482  ;;  %v1440_v45 = vsel %vm1439_vm10, %v1435_v52, inf }
 0x3e9   : > { %vm1484_vm11 = vcmp.eq.f32.partialorder %v3481_v55, %v3795_v25  ;;  %1441 = vmin.xlane.f32.xlu0 %v1440_v45  ;;  %v1510_v55 = vcvt.s32.f32 %v1508_v7  ;;  %v1525_v36 = vcvt.s32.f32 %v1523_v41  ;;  %v1613_v7 = vand.u32 65535, %v3745_v15 }
 0x3ea   : > { %v1485_v23 = vsel %vm1484_vm11, %v1480_v2, inf  ;;  %v1598_v2 = vand.u32 65535, %v3687_v42  ;;  %vm3870_vm11 = vmpackc.low %vm665_vm2, %vm665_vm2 }
 0x3eb   : > { %1486 = vmin.xlane.f32.xlu1 %v1485_v23  ;;  %v1583_v23 = vand.u32 65535, %v3725_v38 }
 0x3ec   : > { %v3800_v63 = vpop.xlane.xlu0 %1467 }
 0x3ed   : > { %vm1469_vm12 = vcmp.eq.f32.partialorder %v3526_v40, %v3800_v63 }
 0x3ee   : > { %v1470_v16 = vsel %vm1469_vm12, %v1465_v51, inf  ;;  %v1600_v51 = vcvt.s32.f32 %v1598_v2  ;;  %v1444_v2 = vcvt.f32.s32 %v3791_v37  ;;  %v1474_v37 = vcvt.f32.s32 %v3800_v63 }
 0x3ef   : > { %1471 = vmin.xlane.f32.xlu0 %v1470_v16 }
 0x3f4   : > { %v3806_v24 = vpop.xlane.xlu1 %1512 }
 0x3f5   : > { %vm1514_vm13 = vcmp.eq.f32.partialorder %v3559_v9, %v3806_v24  ;;  %v1568_v9 = vand.u32 65535, %v3643_v1 }
 0x3f6   : > { %v1515_v59 = vsel %vm1514_vm13, %v1510_v55, inf }
 0x3f7   : > { %1516 = vmin.xlane.f32.xlu1 %v1515_v59  ;;  %v1570_v45 = vcvt.s32.f32 %v1568_v9  ;;  %v1615_v59 = vcvt.s32.f32 %v1613_v7 }
 0x3f8   : > { %v3810_v48 = vpop.xlane.xlu0 %1497 }
 0x3f9   : > { %vm1499_vm14 = vcmp.eq.f32.partialorder %v3589_v5, %v3810_v48  ;;  %v1553_v5 = vand.u32 65535, %v3674_v30 }
 0x3fa   : > { %v1500_v40 = vsel %vm1499_vm14, %v1495_v61, inf  ;;  %v2491_v61 = vmov 0.0|0.0  }
 0x3fb   : > { %1501 = vmin.xlane.f32.xlu0 %v1500_v40  ;;  %v1555_v19 = vcvt.s32.f32 %v1553_v5  ;;  %2277 = vmatprep.subr.bf16.mxu1 %v2491_v61  ;;  %v1459_v5 = vcvt.f32.s32 %v3787_v31 }
 0x3fc   : > { %v3816_v43 = vpop.xlane.xlu1 %1542  ;;  %2309 = vmatprep.subr.bf16.mxu0 %v2491_v61 }
 0x3fd   : > { %vm1544_vm15 = vcmp.eq.f32.partialorder %v3623_v6, %v3816_v43 }
 0x3fe   : > { %v1545_v49 = vsel %vm1544_vm15, %v1540_v34, inf  ;;  %v1414_v34 = vcvt.f32.s32 %v3781_v17  ;;  %v1445_v17 = vshll.u32 %v1444_v2, 16 }
 0x3ff   : > { %1546 = vmin.xlane.f32.xlu1 %v1545_v49 }
 0x401   : > { %v3821_v50 = vpop.xlane.xlu0 %1527 }
 0x402   : > { %vm1529_vm0 = vcmp.eq.f32.partialorder %v3654_v47, %v3821_v50  ;;  %v1628_v47 = vand.u32 65535, %v3729_v62  ;;  %v1585_v62 = vcvt.s32.f32 %v1583_v23  ;;  %v1460_v23 = vshll.u32 %v1459_v5, 16 }
 0x403   : > { %v3826_v52 = vpop.xlane.xlu1 %1572  ;;  %v1530_v8 = vsel %vm1529_vm0, %v1525_v36, inf  ;;  %v1415_v36 = vshll.u32 %v1414_v34, 16  ;;  %v1475_v34 = vshll.u32 %v1474_v37, 16 }
 0x404   : > { %vm1574_vm1 = vcmp.eq.f32.partialorder %v3668_v18, %v3826_v52  ;;  %1531 = vmin.xlane.f32.xlu0 %v1530_v8  ;;  %v1630_v20 = vcvt.s32.f32 %v1628_v47 }
 0x405   : > { %v1575_v6 = vsel %vm1574_vm1, %v1570_v45, inf }
 0x406   : > { %1576 = vmin.xlane.f32.xlu1 %v1575_v6 }
 0x407   : > { %v3831_v1 = vpop.xlane.xlu0 %1557 }
 0x408   : > { %vm1559_vm3 = vcmp.eq.f32.partialorder %v3701_v28, %v3831_v1  ;;  %v3837_v30 = vpop.xlane.xlu1 %1602 }
 0x409   : > { %vm1604_vm4 = vcmp.eq.f32.partialorder %v3706_v39, %v3837_v30  ;;  %v1560_v18 = vsel %vm1559_vm3, %v1555_v19, inf }
 0x40a   : > { %1561 = vmin.xlane.f32.xlu0 %v1560_v18  ;;  %v1605_v42 = vsel %vm1604_vm4, %v1600_v51, inf  ;;  %v1489_v51 = vcvt.f32.s32 %v3795_v25 }
 0x40b   : > { %1606 = vmin.xlane.f32.xlu1 %v1605_v42  ;;  %v3842_v16 = vpop.xlane.xlu0 %1587 }
 0x40c   : > { %v3844_v38 = vpop.xlane.xlu1 %1632  ;;  %vm1589_vm5 = vcmp.eq.f32.partialorder %v3750_v35, %v3842_v16  ;;  %v2493_v35 = vmov 0.0  }
 0x40d   : > { %vm1634_vm6 = vcmp.eq.f32.partialorder %v3752_v60, %v3844_v38  ;;  %v1590_v28 = vsel %vm1589_vm5, %v1585_v62, inf  ;;  %2274 = vmatprep.mubr.msk.f32.mxu0 %vm2492_vm8, %v2493_v35  ;;  %2239 = vmatprep.mubr.msk.f32.mxu1 %vm2492_vm8, %v2493_v35  ;;  %v1429_v60 = vcvt.f32.s32 %v3775_v58 }
 0x40e   : > { %v1635_v39 = vsel %vm1634_vm6, %v1630_v20, inf  ;;  %1591 = vmin.xlane.f32.xlu0 %v1590_v28 }
 0x40f   : > { %1636 = vmin.xlane.f32.xlu1 %v1635_v39  ;;  %v3850_v55 = vpop.xlane.xlu0 %1617  ;;  %v1430_v40 = vshll.u32 %v1429_v60, 16  ;;  %v1490_v39 = vshll.u32 %v1489_v51, 16 }
 0x410   : > { %vm1619_vm7 = vcmp.eq.f32.partialorder %v3760_v46, %v3850_v55 }
 0x411   : > { %v1620_v15 = vsel %vm1619_vm7, %v1615_v59, inf }
 0x412   : > { %1621 = vmin.xlane.f32.xlu0 %v1620_v15 }
 0x46b   : > { %v1427_v0 = vpop.xlane.xlu1 %1426 }
 0x46c   : > { %v1428_v41 = vcvt.f32.s32 %v1427_v0 }
 0x46e   : > { %v1431_v9 = vadd.s32 %v1430_v40, %v1428_v41 }
 0x470   : > { %v1659_v46 = vand.u32 4294967288, %v1431_v9  ;;  %v1412_v49 = vpop.xlane.xlu0 %1411  ;;  %vm1643_vm9 = vcmp.eq.s32.totalorder %v3379_v53, %v1431_v9 }
 0x471   : > { %v1413_v8 = vcvt.f32.s32 %v1412_v49 }
 0x472   : > { %v1691_v45 = vmax.f32 %v1659_v46, 1e-10 }
 0x473   : > { %v1416_v6 = vadd.s32 %v1415_v36, %v1413_v8  ;;  %v1519_v8 = vcvt.f32.s32 %v3806_v24 }
 0x474   : > { %2433 = vrcp.f32 %v1691_v45  ;;  %v1457_v19 = vpop.xlane.xlu1 %1456 }
 0x475   : > { %v1658_v58 = vand.u32 4294967288, %v1416_v6  ;;  %v1458_v47 = vcvt.f32.s32 %v1457_v19  ;;  %vm1642_vm10 = vcmp.eq.s32.totalorder %v3395_v3, %v1416_v6  ;;  %v1504_v19 = vcvt.f32.s32 %v3810_v48 }
 0x476   : > { %v1442_v18 = vpop.xlane.xlu0 %1441 }
 0x477   : > { %v1690_v42 = vmax.f32 %v1658_v58, 1e-10  ;;  %v1461_v7 = vadd.s32 %v1460_v23, %v1458_v47  ;;  %v1443_v62 = vcvt.f32.s32 %v1442_v18  ;;  %v1520_v23 = vshll.u32 %v1519_v8, 16 }
 0x478   : > { %v1487_v20 = vpop.xlane.xlu1 %1486  ;;  %v1505_v6 = vshll.u32 %v1504_v19, 16  ;;  %v1549_v18 = vcvt.f32.s32 %v3816_v43 }
 0x479   : > { %2435 = vrcp.f32 %v1690_v42  ;;  %v1661_v31 = vand.u32 4294967288, %v1461_v7  ;;  %v1446_v28 = vadd.s32 %v1445_v17, %v1443_v62  ;;  %v1488_v59 = vcvt.f32.s32 %v1487_v20 }
 0x47a   : > { %vm1645_vm12 = vcmp.eq.s32.totalorder %v3418_v14, %v1461_v7 }
 0x47b   : > { %v1693_v15 = vmax.f32 %v1661_v31, 1e-10  ;;  %v1660_v35 = vand.u32 4294967288, %v1446_v28  ;;  %v1491_v60 = vadd.s32 %v1490_v39, %v1488_v59  ;;  %vm1644_vm13 = vcmp.eq.s32.totalorder %v3434_v13, %v1446_v28 }
 0x47c   : > { %v1472_v41 = vpop.xlane.xlu0 %1471  ;;  %v1550_v28 = vshll.u32 %v1549_v18, 16  ;;  %v4058_v18 = vld [vmem:[#allocation17_spill] sm:$0xff] }
 0x47d   : > { %2437 = vrcp.f32 %v1693_v15  ;;  %v1692_v0 = vmax.f32 %v1660_v35, 1e-10  ;;  %v1663_v25 = vand.u32 4294967288, %v1491_v60  ;;  %v1473_v49 = vcvt.f32.s32 %v1472_v41 }
 0x47e   : > { %v2434_v40 = vpop.eup %2433  ;;  %vm1647_vm14 = vcmp.eq.s32.totalorder %v3455_v29, %v1491_v60  ;;  %v1534_v15 = vcvt.f32.s32 %v3821_v50 }
 0x47f   : > { %v1723_v46 = vsel %vm1643_vm9, %v2434_v40, 0.0  ;;  %2439 = vrcp.f32 %v1692_v0  ;;  %v1695_v36 = vmax.f32 %v1663_v25, 1e-10  ;;  %v1476_v63 = vadd.s32 %v1475_v34, %v1473_v49 }
 0x480   : > { %v1739_v5 = vadd.f32 %v1723_v46, %v3468_v57  ;;  %v4057_v46 = vld [vmem:[#allocation13_spill] sm:$0xff]  ;;  %v1535_v50 = vshll.u32 %v1534_v15, 16 }
 0x481   : > { %2441 = vrcp.f32 %v1695_v36  ;;  %v1662_v2 = vand.u32 4294967288, %v1476_v63  ;;  %vm1646_vm15 = vcmp.eq.s32.totalorder %v4057_v46, %v1476_v63  ;;  %v1564_v36 = vcvt.f32.s32 %v3831_v1 }
 0x482   : > { %v1609_v63 = vcvt.f32.s32 %v3837_v30 }
 0x483   : > { %v2436_v45 = vpop.eup %2435  ;;  %v1694_v58 = vmax.f32 %v1662_v2, 1e-10 }
 0x484   : > { %v1722_v53 = vsel %vm1642_vm10, %v2436_v45, 0.0  ;;  %v1517_v9 = vpop.xlane.xlu1 %1516 }
 0x485   : > { %v1518_v47 = vcvt.f32.s32 %v1517_v9  ;;  %v1738_v51 = vadd.f32 %v1722_v53, %v3490_v26  ;;  %2443 = vrcp.f32 %v1694_v58 }
 0x487   : > { %v2438_v24 = vpop.eup %2437  ;;  %v3875_v3 = vadd.s32 %v1520_v23, %v1518_v47  ;;  %v2278_v48 = vpack.c.bf16 %v1739_v5, %v1738_v51  ;;  %v1565_v47 = vshll.u32 %v1564_v36, 16 }
 0x488   : > { %v1725_v17 = vsel %vm1645_vm12, %v2438_v24, 0.0  ;;  %v1502_v42 = vpop.xlane.xlu0 %1501 }
 0x489   : > { %v2440_v62 = vpop.eup %2439  ;;  %v1741_v26 = vadd.f32 %v1725_v17, %v3518_v21  ;;  %v1665_v20 = vand.u32 4294967288, %v3875_v3  ;;  %v1503_v31 = vcvt.f32.s32 %v1502_v42  ;;  %2280 = vmatpush3.bf16.xpose.msk.msra.mxu1 %vm3870_vm11, %v2278_v48  ;;  %2312 = vmatpush3.bf16.xpose.msk.msra.mxu0 %vm3870_vm11, %v2278_v48  ;;  %vm1649_vm0 = vcmp.eq.s32.totalorder %v3515_v33, %v3875_v3 }
 0x48a   : > { %v1724_v14 = vsel %vm1644_vm13, %v2440_v62, 0.0  ;;  %2281 = vmatprep.subr.bf16.mxu1 %v2491_v61  ;;  %2313 = vmatprep.subr.bf16.mxu0 %v2491_v61  ;;  %v1639_v33 = vcvt.f32.s32 %v3844_v38  ;;  %v4060_v38 = vld [vmem:[#allocation5_spill] sm:$0xff] }
 0x48b   : > { %v1740_v43 = vadd.f32 %v1724_v14, %v3529_v22  ;;  %v1697_v7 = vmax.f32 %v1665_v20, 1e-10  ;;  %v3888_v21 = vadd.s32 %v1505_v6, %v1503_v31  ;;  %v2442_v13 = vpop.eup %2441  ;;  %v1579_v22 = vcvt.f32.s32 %v3826_v52 }
 0x48c   : > { %v1727_v39 = vsel %vm1647_vm14, %v2442_v13, 0.0  ;;  %v1547_v37 = vpop.xlane.xlu1 %1546  ;;  %v1594_v6 = vcvt.f32.s32 %v3842_v16  ;;  %v4059_v16 = vld [vmem:[#allocation14_spill] sm:$0xff] }
 0x48d   : > { %2445 = vrcp.f32 %v1697_v7  ;;  %v1664_v59 = vand.u32 4294967288, %v3888_v21  ;;  %v1743_v35 = vadd.f32 %v1727_v39, %v3555_v56  ;;  %v1548_v0 = vcvt.f32.s32 %v1547_v37 }
 0x48e   : > { %v2282_v40 = vpack.c.bf16 %v1741_v26, %v1740_v43  ;;  %v1580_v52 = vshll.u32 %v1579_v22, 16  ;;  %vm1648_vm1 = vcmp.eq.s32.totalorder %v4059_v16, %v3888_v21  ;;  %v1595_v13 = vshll.u32 %v1594_v6, 16  ;;  %v4061_v21 = vld [vmem:[#allocation15_spill] sm:$0xff]  ;;  %v4066_v6 = vld [vmem:[#allocation6_spill] sm:$0xff] }
 0x48f   : > { %v1696_v25 = vmax.f32 %v1664_v59, 1e-10  ;;  %v3895_v41 = vadd.s32 %v1550_v28, %v1548_v0  ;;  %v2444_v34 = vpop.eup %2443  ;;  %v1624_v28 = vcvt.f32.s32 %v3850_v55  ;;  %v1640_v37 = vshll.u32 %v1639_v33, 16 }
 0x490   : > { %v1726_v56 = vsel %vm1646_vm15, %v2444_v34, 0.0 }
 0x491   : > { %2447 = vrcp.f32 %v1696_v25  ;;  %v1532_v29 = vpop.xlane.xlu0 %1531  ;;  %2284 = vmatpush3.bf16.xpose.msk.msra.mxu1 %vm3870_vm11, %v2282_v40  ;;  %2316 = vmatpush3.bf16.xpose.msk.msra.mxu0 %vm3870_vm11, %v2282_v40  ;;  %v1667_v60 = vand.u32 4294967288, %v3895_v41  ;;  %v1742_v5 = vadd.f32 %v1726_v56, %v3581_v12  ;;  %v1610_v12 = vshll.u32 %v1609_v63, 16  ;;  %v4063_v63 = vld [vmem:[#allocation16_spill] sm:$0xff] }
 0x492   : > { %v1533_v49 = vcvt.f32.s32 %v1532_v29  ;;  %2285 = vmatprep.subr.bf16.mxu1 %v2491_v61  ;;  %2317 = vmatprep.subr.bf16.mxu0 %v2491_v61  ;;  %vm1651_vm3 = vcmp.eq.s32.totalorder %v4061_v21, %v3895_v41  ;;  %v1625_v56 = vshll.u32 %v1624_v28, 16  ;;  %v4070_v28 = vlaneseq }
 0x493   : > { %v1577_v8 = vpop.xlane.xlu1 %1576  ;;  %v1699_v45 = vmax.f32 %v1667_v60, 1e-10  ;;  %v2286_v53 = vpack.c.bf16 %v1743_v35, %v1742_v5 }
 0x494   : > { %v3908_v2 = vadd.s32 %v1535_v50, %v1533_v49  ;;  %v1578_v19 = vcvt.f32.s32 %v1577_v8  ;;  %v4062_v49 = vld [vmem:[#allocation8_spill] sm:$0xff] }
 0x495   : > { %2449 = vrcp.f32 %v1699_v45 }
 0x496   : > { %v1666_v9 = vand.u32 4294967288, %v3908_v2  ;;  %v3911_v23 = vadd.s32 %v1580_v52, %v1578_v19  ;;  %vm1650_vm4 = vcmp.eq.s32.totalorder %v4063_v63, %v3908_v2 }
 0x497   : > { %v2446_v58 = vpop.eup %2445  ;;  %v1562_v1 = vpop.xlane.xlu0 %1561 }
 0x498   : > { %v1729_v51 = vsel %vm1649_vm0, %v2446_v58, 0.0  ;;  %v1698_v24 = vmax.f32 %v1666_v9, 1e-10  ;;  %v1669_v30 = vand.u32 4294967288, %v3911_v23  ;;  %v1607_v48 = vpop.xlane.xlu1 %1606  ;;  %v1563_v42 = vcvt.f32.s32 %v1562_v1 }
 0x499   : > { %v1745_v17 = vadd.f32 %v1729_v51, %v4058_v18  ;;  %v1608_v62 = vcvt.f32.s32 %v1607_v48  ;;  %2288 = vmatpush3.bf16.xpose.msk.msra.mxu1 %vm3870_vm11, %v2286_v53  ;;  %2320 = vmatpush3.bf16.xpose.msk.msra.mxu0 %vm3870_vm11, %v2286_v53 }
 0x49a   : > { %2451 = vrcp.f32 %v1698_v24  ;;  %v1701_v3 = vmax.f32 %v1669_v30, 1e-10  ;;  %2289 = vmatprep.subr.bf16.mxu1 %v2491_v61  ;;  %2321 = vmatprep.subr.bf16.mxu0 %v2491_v61  ;;  %v1566_v20 = vadd.s32 %v1565_v47, %v1563_v42  ;;  %v4064_v47 = vld [vmem:[#allocation3_spill] sm:$0xff] }
 0x49b   : > { %v2448_v26 = vpop.eup %2447  ;;  %v1611_v31 = vadd.s32 %v1610_v12, %v1608_v62  ;;  %v1592_v43 = vpop.xlane.xlu0 %1591  ;;  %v4065_v12 = vld [vmem:[#allocation2_spill] sm:$0xff] }
 0x49c   : > { %v1728_v14 = vsel %vm1648_vm1, %v2448_v26, 0.0  ;;  %2453 = vrcp.f32 %v1701_v3  ;;  %v1637_v7 = vpop.xlane.xlu1 %1636  ;;  %v1668_v59 = vand.u32 4294967288, %v1566_v20  ;;  %v1593_v35 = vcvt.f32.s32 %v1592_v43 }
 0x49d   : > { %v1744_v39 = vadd.f32 %v1728_v14, %v4060_v38  ;;  %v1671_v15 = vand.u32 4294967288, %v1611_v31  ;;  %v1638_v0 = vcvt.f32.s32 %v1637_v7  ;;  %vm1653_vm5 = vcmp.eq.s32.totalorder %v4065_v12, %v3911_v23 }
 0x49e   : > { %v1700_v40 = vmax.f32 %v1668_v59, 1e-10  ;;  %v1596_v46 = vadd.s32 %v1595_v13, %v1593_v35  ;;  %vm1652_vm6 = vcmp.eq.s32.totalorder %v4066_v6, %v1566_v20  ;;  %v4068_v20 = vld [vmem:[#allocation9_spill] sm:$0xff]  ;;  %v1949_v38 = vshrl.u32 %v4070_v28, 7 }
 0x49f   : > { %v2290_v22 = vpack.c.bf16 %v1745_v17, %v1744_v39  ;;  %v2450_v25 = vpop.eup %2449  ;;  %v1703_v34 = vmax.f32 %v1671_v15, 1e-10  ;;  %v1641_v29 = vadd.s32 %v1640_v37, %v1638_v0  ;;  %v1622_v50 = vpop.xlane.xlu0 %1621  ;;  %v4067_v17 = vld [vmem:[#allocation4_spill] sm:$0xff] }
 0x4a0   : > { %v1731_v60 = vsel %vm1651_vm3, %v2450_v25, 0.0  ;;  %2455 = vrcp.f32 %v1700_v40  ;;  %v1623_v55 = vcvt.f32.s32 %v1622_v50  ;;  %v1670_v36 = vand.u32 4294967288, %v1596_v46 }
 0x4a1   : > { %2292 = vmatpush3.bf16.xpose.msk.msra.mxu1 %vm3870_vm11, %v2290_v22  ;;  %2324 = vmatpush3.bf16.xpose.msk.msra.mxu0 %vm3870_vm11, %v2290_v22  ;;  %v1747_v52 = vadd.f32 %v1731_v60, %v4062_v49  ;;  %2457 = vrcp.f32 %v1703_v34  ;;  %v1673_v41 = vand.u32 4294967288, %v1641_v29  ;;  %vm1655_vm7 = vcmp.eq.s32.totalorder %v4067_v17, %v1611_v31  ;;  %v4069_v31 = vld [vmem:[#allocation10_spill] sm:$0xff] }
 0x4a2   : > { %2293 = vmatprep.subr.bf16.mxu1 %v2491_v61  ;;  %2325 = vmatprep.subr.bf16.mxu0 %v2491_v61  ;;  %v1626_v5 = vadd.s32 %v1625_v56, %v1623_v55  ;;  %v1702_v45 = vmax.f32 %v1670_v36, 1e-10  ;;  %vm1654_vm8 = vcmp.eq.s32.totalorder %v3712_v10, %v1596_v46  ;;  %vm1657_vm9 = vcmp.eq.s32.totalorder %v4068_v20, %v1641_v29 }
 0x4a3   : > { %v1705_v53 = vmax.f32 %v1673_v41, 1e-10 }
 0x4a4   : > { %v2452_v8 = vpop.eup %2451  ;;  %v1672_v9 = vand.u32 4294967288, %v1626_v5  ;;  %2459 = vrcp.f32 %v1702_v45  ;;  %vm1656_vm10 = vcmp.eq.s32.totalorder %v4069_v31, %v1626_v5 }
 0x4a5   : > { %v1730_v19 = vsel %vm1650_vm4, %v2452_v8, 0.0  ;;  %2461 = vrcp.f32 %v1705_v53 }
 0x4a6   : > { %v2454_v58 = vpop.eup %2453  ;;  %v1746_v1 = vadd.f32 %v1730_v19, %v4064_v47  ;;  %v1704_v24 = vmax.f32 %v1672_v9, 1e-10 }
 0x4a7   : > { %v1733_v51 = vsel %vm1653_vm5, %v2454_v58, 0.0 }
 0x4a8   : > { %v1749_v30 = vadd.f32 %v1733_v51, %v3696_v11  ;;  %v2294_v48 = vpack.c.bf16 %v1747_v52, %v1746_v1  ;;  %2463 = vrcp.f32 %v1704_v24 }
 0x4aa   : > { %2296 = vmatpush3.bf16.xpose.msk.msra.mxu1 %vm3870_vm11, %v2294_v48  ;;  %2328 = vmatpush3.bf16.xpose.msk.msra.mxu0 %vm3870_vm11, %v2294_v48  ;;  %v2456_v2 = vpop.eup %2455 }
 0x4ab   : > { %2297 = vmatprep.subr.bf16.mxu1 %v2491_v61  ;;  %2329 = vmatprep.subr.bf16.mxu0 %v2491_v61  ;;  %v2458_v23 = vpop.eup %2457  ;;  %v1732_v18 = vsel %vm1652_vm6, %v2456_v2, 0.0 }
 0x4ac   : > { %v1748_v11 = vadd.f32 %v1732_v18, %v3704_v27  ;;  %v1735_v42 = vsel %vm1655_vm7, %v2458_v23, 0.0 }
 0x4ad   : > { %v1751_v62 = vadd.f32 %v1735_v42, %v3738_v54 }
 0x4ae   : > { %v2298_v33 = vpack.c.bf16 %v1749_v30, %v1748_v11  ;;  %v2460_v3 = vpop.eup %2459 }
 0x4af   : > { %v2462_v26 = vpop.eup %2461  ;;  %v1734_v16 = vsel %vm1654_vm8, %v2460_v3, 0.0 }
 0x4b0   : > { %v1750_v14 = vadd.f32 %v1734_v16, %v3756_v44  ;;  %v1737_v43 = vsel %vm1657_vm9, %v2462_v26, 0.0 }
 0x4b1   : > { %v1753_v54 = vadd.f32 %v1737_v43, %v3765_v4  ;;  %v298_v4 = vld [vmem:[%s272_s7] sm:$0x3f] }
 0x4b2   : > { %2300 = vmatpush3.bf16.xpose.msk.msra.mxu1 %vm3870_vm11, %v2298_v33  ;;  %2332 = vmatpush3.bf16.xpose.msk.msra.mxu0 %vm3870_vm11, %v2298_v33  ;;  %v2464_v27 = vpop.eup %2463  ;;  %v2302_v7 = vpack.c.bf16 %v1751_v62, %v1750_v14 }
 0x4b3   : > { %2301 = vmatprep.subr.bf16.mxu1 %v2491_v61  ;;  %2333 = vmatprep.subr.bf16.mxu0 %v2491_v61  ;;  %v1736_v10 = vsel %vm1656_vm10, %v2464_v27, 0.0 }
 0x4b4   : > { %v1752_v44 = vadd.f32 %v1736_v10, %v3772_v32  ;;  %v2494_v32 = vmov 1.0  }
 0x4b6   : > { %v2306_v13 = vpack.c.bf16 %v1753_v54, %v1752_v44 }
 0x4ba   : > { %2304 = vmatpush3.bf16.xpose.msk.msra.mxu1 %vm3870_vm11, %v2302_v7  ;;  %2336 = vmatpush3.bf16.xpose.msk.msra.mxu0 %vm3870_vm11, %v2302_v7 }
 0x4bb   : > { %2305 = vmatprep.subr.bf16.mxu1 %v2491_v61  ;;  %2337 = vmatprep.subr.bf16.mxu0 %v2491_v61  ;;  %v1950_v61 = vsub.s32 0, %v1949_v38 }
 0x4c2   : > { %2308 = vmatpush3.bf16.xpose.msk.msra.mxu1 %vm3870_vm11, %v2306_v13  ;;  %2340 = vmatpush3.bf16.xpose.msk.msra.mxu0 %vm3870_vm11, %v2306_v13 }
 0x4c9   : > { %2275 = vmatmul.mubr.msk.f32.vlgmr.msra.gmra.mrb[16].mxu0 %vm665_vm2, %v2494_v32  ;;  %2240 = vmatmul.mubr.msk.f32.vlgmr.msra.gmra.mrb[0].mxu1 %vm665_vm2, %v298_v4 }
 0x59c   : > { %v1944_v39 = vpop.f32.mrb[16].mxu0  ;;  %v1871_v59 = vpop.f32.mrb[0].mxu1 }
 0x59d   : > { %v1951_v37 = vrot.slane %v1944_v39, %v1950_v61  ;;  %v2276_v15 = vpop.f32.mrb[17].mxu0  ;;  %v2241_v35 = vpop.f32.mrb[1].mxu1 }
 0x59f   : > { %2465 = vrcp.f32 %v1951_v37 }
 0x5a9   : > { %v2466_v57 = vpop.eup %2465 }
 0x5aa   : > { %v1953_v0 = vmul.f32 %v2466_v57, %v1871_v59 }
 0x5ac   : > { %1954 = vst [vmem:[%s279_s10] sm:$0x3f] %v1953_v0 }
 0x5ad PF: > { %s14_s17 = sadd.s32 1, %s2489_s17   ;;  %s4071_s15 = smov %s2485_s16 }
 0x5ae   : > { %p11_p5 = scmp.ge.s32.totalorder %s14_s17, 4   ;;  %s4072_s16 = smov %s4074_s18 }
 0x5b0   :  { %13 = sbr.rel (!%p11_p5) target bundleno = 2 (0x2), region = 75 }

</bundles_post_ra>
